<compile_context>
chip_gen: v7x
topology: tpu7x:2x2x1
jax: 0.10.0
libtpu: 0.0.40
codegen_flags: <defaults>
</compile_context>

<pallas_src>
import functools

import jax
import jax.numpy as jnp
from jax.experimental import pallas as pl
from jax.experimental.pallas import tpu as pltpu

LANE = 128          # lane width; projection output is padded to a multiple of this
MAX_ROW_TILE = 256  # upper bound on the row tile (VMEM / pipelining sweet spot)


def _pick_row_tile(n, max_tile=MAX_ROW_TILE):
    """Largest sublane-friendly tile that evenly divides n (falls back to full n)."""
    if n <= max_tile and n % 8 == 0:
        return n
    t = (min(n, max_tile) // 8) * 8
    while t >= 8:
        if n % t == 0:
            return t
        t -= 8
    return n  # full-extent block (always legal); single grid step


# ---------------------------------------------------------------------------
# Kernel 1: fused projection   proj = h @ [W_fc | W_skip | 0-pad]
# grid over source-row tiles ("parallel")
# ---------------------------------------------------------------------------
def _proj_kernel(h_ref, wp_ref, out_ref):
    out_ref[...] = jnp.dot(h_ref[...], wp_ref[...],
                           preferred_element_type=jnp.float32)


def gat_project(h, wp, *, tile_rows=None):
    n, f_in = h.shape
    pw = wp.shape[1]
    if tile_rows is None:
        tile_rows = _pick_row_tile(n)
    return pl.pallas_call(
        _proj_kernel,
        out_shape=jax.ShapeDtypeStruct((n, pw), jnp.float32),
        grid=(n // tile_rows,),
        in_specs=[pl.BlockSpec((tile_rows, f_in), lambda i: (i, 0)),
                  pl.BlockSpec((f_in, pw), lambda i: (0, 0))],
        out_specs=pl.BlockSpec((tile_rows, pw), lambda i: (i, 0)),
        compiler_params=pltpu.CompilerParams(
            dimension_semantics=("parallel",)),
        cost_estimate=pl.CostEstimate(
            flops=int(2 * n * f_in * pw), transcendentals=0,
            bytes_accessed=int(4 * (n * f_in + f_in * pw + n * pw))),
    )(h, wp)


# ---------------------------------------------------------------------------
# Kernel 2: fused GAT attention + skip (+ ELU or head-mean + log_softmax)
# grid over destination-row tiles ("parallel")
# ---------------------------------------------------------------------------
def _attn_kernel(adj_ref, proj_ref, a_l_ref, a_rt_ref, bias_ref, out_ref, *,
                 heads, head_dim, out_w, is_last, tile_rows):
    hd = heads * head_dim
    row0 = pl.multiple_of(pl.program_id(0) * tile_rows, tile_rows)

    proj = proj_ref[...]                               # [N_src, PW]  f32 (resident)
    feat = proj[:, :hd]                                # [N_src, HD]
    # dst nodes are the prefix of src nodes -> reuse the already-resident
    # projection slab instead of DMA-ing h_dst again.
    dstp = proj_ref[pl.ds(row0, tile_rows), :]         # [T, PW]
    dst_feat = dstp[:, :hd]                            # [T, HD]
    skip = dstp[:, hd:hd + out_w]                      # [T, out_w]

    adj = adj_ref[...]                                 # [T, N_src] 0/1 mask

    # el[k, s] = feat[s] . attn_l[k]   (dot with RHS transposed -> row layout)
    el_t = jax.lax.dot_general(a_l_ref[...], feat,
                               (((1,), (1,)), ((), ())),
                               preferred_element_type=jnp.float32)   # [H, N_src]
    # er[d, k] = dst_feat[d] . attn_r[k]
    er = jnp.dot(dst_feat, a_rt_ref[...],
                 preferred_element_type=jnp.float32)                 # [T, H]

    neg = jnp.float32(-1e30)
    head_outs = []
    acc = jnp.zeros((tile_rows, head_dim), jnp.float32)
    for k in range(heads):
        e = er[:, k:k + 1] + el_t[k:k + 1, :]          # [T, N_src]
        e = jnp.where(e > 0, e, 0.2 * e)               # LeakyReLU(0.2)
        e = jnp.where(adj > 0, e, neg)                 # mask non-edges
        m = jnp.max(e, axis=-1, keepdims=True)
        p = jnp.exp(e - m) * adj
        denom = jnp.sum(p, axis=-1, keepdims=True)
        inv = pl.reciprocal(jnp.maximum(denom, 1e-9), approx=True)   # EUP slot
        alpha = p * inv                                # zero in-degree -> all zeros
        fk = feat[:, k * head_dim:(k + 1) * head_dim]  # [N_src, D]
        # dominant matmul: bf16 MXU inputs, f32 accumulation
        ok = jnp.dot(alpha.astype(jnp.bfloat16), fk.astype(jnp.bfloat16),
                     preferred_element_type=jnp.float32)             # [T, D]
        if is_last:
            acc = acc + ok
        else:
            head_outs.append(ok)

    if is_last:
        attn = acc * (1.0 / heads)                     # mean over heads
    else:
        attn = jnp.concatenate(head_outs, axis=-1)     # flatten heads  [T, HD]

    # conv bias + skip bias are pre-folded into bias_ref
    h_new = attn + skip + bias_ref[...]

    if is_last:
        m = jnp.max(h_new, axis=-1, keepdims=True)
        s = h_new - m
        lse = jnp.log(jnp.sum(jnp.exp(s), axis=-1, keepdims=True))
        out_ref[...] = s - lse                         # fused log_softmax
    else:
        # ELU (alpha=1); dropout == identity in eval mode
        out_ref[...] = jnp.where(h_new > 0, h_new,
                                 jnp.exp(jnp.minimum(h_new, 0.0)) - 1.0)


def gat_attention(adj, proj, a_l, a_rt, bias, *, heads, head_dim, out_w,
                  is_last, tile_rows=None):
    n_dst, n_src = adj.shape
    pw = proj.shape[1]
    hd = heads * head_dim
    if tile_rows is None:
        tile_rows = _pick_row_tile(n_dst)
    kernel = functools.partial(_attn_kernel, heads=heads, head_dim=head_dim,
                               out_w=out_w, is_last=is_last,
                               tile_rows=tile_rows)
    flops = 2 * n_dst * n_src * hd + 4 * n_dst * n_src * heads + 4 * n_dst * hd * heads
    return pl.pallas_call(
        kernel,
        out_shape=jax.ShapeDtypeStruct((n_dst, out_w), jnp.float32),
        grid=(n_dst // tile_rows,),
        in_specs=[pl.BlockSpec((tile_rows, n_src), lambda i: (i, 0)),
                  pl.BlockSpec((n_src, pw), lambda i: (0, 0)),
                  pl.BlockSpec((heads, hd), lambda i: (0, 0)),
                  pl.BlockSpec((hd, heads), lambda i: (0, 0)),
                  pl.BlockSpec((1, out_w), lambda i: (0, 0))],
        out_specs=pl.BlockSpec((tile_rows, out_w), lambda i: (i, 0)),
        compiler_params=pltpu.CompilerParams(
            dimension_semantics=("parallel",)),
        cost_estimate=pl.CostEstimate(
            flops=int(flops),
            transcendentals=int(n_dst * n_src * heads),
            bytes_accessed=int(4 * (n_dst * n_src + n_src * pw + n_dst * out_w))),
    )(adj, proj, a_l, a_rt, bias)


# ---------------------------------------------------------------------------
# Parameter preparation (pure JAX, done once): fuse fc+skip weights, fold biases
# ---------------------------------------------------------------------------
def prepare_params(raw, *, heads):
    n_layers = len(raw['w_fc'])
    params = {'wp': [], 'a_l': [], 'a_rt': [], 'bias': [],
              'head_dim': [], 'out_w': [], 'heads': heads}
    for l in range(n_layers):
        w_fc = raw['w_fc'][l].astype(jnp.float32)        # [F_in, H*D]
        w_skip = raw['w_skip'][l].astype(jnp.float32)    # [F_in, out_w]
        attn_l, attn_r = raw['attn_l'][l], raw['attn_r'][l]
        h_, d_ = attn_l.shape
        hd = h_ * d_
        out_w = w_skip.shape[1]
        pw = max(LANE, ((hd + out_w + LANE - 1) // LANE) * LANE)

        wp = jnp.concatenate([w_fc, w_skip], axis=1)       # fused projection
        wp = jnp.pad(wp, ((0, 0), (0, pw - wp.shape[1])))  # lane-pad to multiple of 128

        a_l = jnp.zeros((h_, hd), jnp.float32)             # block-diag attn vectors
        a_rt = jnp.zeros((hd, h_), jnp.float32)
        for k in range(h_):
            a_l = a_l.at[k, k * d_:(k + 1) * d_].set(attn_l[k])
            a_rt = a_rt.at[k * d_:(k + 1) * d_, k].set(attn_r[k])

        if l < n_layers - 1:
            bias = (raw['gat_bias'][l] + raw['b_skip'][l]).reshape(1, hd)
        else:  # head-mean of the conv bias + skip bias
            gb = raw['gat_bias'][l].reshape(h_, d_).mean(axis=0)
            bias = (gb + raw['b_skip'][l]).reshape(1, out_w)

        params['wp'].append(wp)
        params['a_l'].append(a_l)
        params['a_rt'].append(a_rt)
        params['bias'].append(bias.astype(jnp.float32))
        params['head_dim'].append(d_)
        params['out_w'].append(out_w)
    return params


def gat_forward(blocks_adj, x, params):
    h = x
    n_layers = len(blocks_adj)
    for l in range(n_layers):
        is_last = (l == n_layers - 1)
        proj = gat_project(h, params['wp'][l])
        h = gat_attention(blocks_adj[l], proj, params['a_l'][l],
                          params['a_rt'][l], params['bias'][l],
                          heads=params['heads'],
                          head_dim=params['head_dim'][l],
                          out_w=params['out_w'][l], is_last=is_last)
    return h   # log_softmax already applied inside the last kernel


# ---------------------------------------------------------------------------
# Pure-JAX reference for validation
# ---------------------------------------------------------------------------
def reference_forward(blocks_adj, x, raw):
    h = x
    n_layers = len(blocks_adj)
    for l in range(n_layers):
        adj = blocks_adj[l]
        n_dst = adj.shape[0]
        h_dst = h[:n_dst]
        attn_l, attn_r = raw['attn_l'][l], raw['attn_r'][l]
        heads, d = attn_l.shape
        fs = (h @ raw['w_fc'][l]).reshape(-1, heads, d)
        fd = (h_dst @ raw['w_fc'][l]).reshape(-1, heads, d)
        el = (fs * attn_l[None]).sum(-1)               # [N_src, H]
        er = (fd * attn_r[None]).sum(-1)               # [N_dst, H]
        e = er[:, None, :] + el[None, :, :]            # [N_dst, N_src, H]
        e = jnp.where(e > 0, e, 0.2 * e)
        e = jnp.where(adj[:, :, None] > 0, e, -1e30)
        m = e.max(axis=1, keepdims=True)
        p = jnp.exp(e - m) * adj[:, :, None]
        alpha = p / jnp.maximum(p.sum(axis=1, keepdims=True), 1e-9)
        rst = jnp.einsum('dsh,shf->dhf', alpha, fs)
        rst = rst + raw['gat_bias'][l].reshape(1, heads, d)
        if l < n_layers - 1:
            out = rst.reshape(n_dst, heads * d)
        else:
            out = rst.mean(axis=1)
        out = out + h_dst @ raw['w_skip'][l] + raw['b_skip'][l]
        if l < n_layers - 1:
            out = jnp.where(out > 0, out, jnp.exp(out) - 1.0)   # ELU
        h = out
    return jax.nn.log_softmax(h, axis=-1)


if __name__ == "__main__":
    in_channels, hidden_channels, out_channels = 16, 32, 8
    num_layers, heads = 3, 4
    # per-hop sampled node counts (sublane aligned); dst nodes = prefix of src nodes
    node_counts = [32, 24, 16, 8]

    key = jax.random.PRNGKey(0)
    keys = iter(jax.random.split(key, 64))

    x = jax.random.normal(next(keys), (node_counts[0], in_channels),
                          dtype=jnp.float32)

    blocks_adj = []
    for l in range(num_layers):
        n_dst, n_src = node_counts[l + 1], node_counts[l]
        adj = (jax.random.uniform(next(keys), (n_dst, n_src)) < 0.4)
        blocks_adj.append(adj.astype(jnp.float32))

    raw = {'w_fc': [], 'attn_l': [], 'attn_r': [], 'gat_bias': [],
           'w_skip': [], 'b_skip': []}
    for l in range(num_layers):
        f_in = in_channels if l == 0 else hidden_channels
        if l < num_layers - 1:
            per_head = hidden_channels // heads
            skip_out = hidden_channels
        else:
            per_head = out_channels
            skip_out = out_channels
        hd = heads * per_head
        raw['w_fc'].append(0.1 * jax.random.normal(next(keys), (f_in, hd)))
        raw['attn_l'].append(0.2 * jax.random.normal(next(keys), (heads, per_head)))
        raw['attn_r'].append(0.2 * jax.random.normal(next(keys), (heads, per_head)))
        raw['gat_bias'].append(0.05 * jax.random.normal(next(keys), (hd,)))
        raw['w_skip'].append(0.1 * jax.random.normal(next(keys), (f_in, skip_out)))
        raw['b_skip'].append(0.05 * jax.random.normal(next(keys), (skip_out,)))

    params = prepare_params(raw, heads=heads)

    # one jitted program for the whole multi-layer forward (weights folded as consts)
    fwd = jax.jit(functools.partial(gat_forward, params=params))
    out = fwd(blocks_adj, x)
    out = jax.block_until_ready(out)

    ref = reference_forward(blocks_adj, x, raw)
    assert out.shape == (node_counts[-1], out_channels)
    # bf16 aggregation matmul + approx reciprocal -> slightly loosened tolerance
    assert jnp.allclose(out, ref, atol=2e-2, rtol=2e-2), \
        "Pallas output mismatch vs reference"

    print("KERNEL_OK")
</pallas_src>

<mosaic_0001>
module attributes {stable_mosaic.version = 11 : i64} {
  func.func @_proj_kernel(%arg0: i32, %arg1: memref<24x32xf32, #tpu.memory_space<vmem>>, %arg2: memref<32x128xf32, #tpu.memory_space<vmem>>, %arg3: memref<24x128xf32, #tpu.memory_space<vmem>>) attributes {dimension_semantics = [#tpu.dimension_semantics<parallel>], iteration_bounds = array<i64: 1>, scalar_prefetch = 0 : i64, scratch_operands = 0 : i64, tpu.core_type = #tpu.core_type<tc>, window_params = [{transform_indices = @transform_0, window_bounds = array<i64: 24, 32>}, {pipeline_mode = #tpu.pipeline_mode<synchronous>, transform_indices = @transform_1, window_bounds = array<i64: 32, 128>}, {transform_indices = @transform_2, window_bounds = array<i64: 24, 128>}]} {
    %c0 = arith.constant 0 : index
    %c0_0 = arith.constant 0 : index
    %0 = vector.load %arg1[%c0, %c0_0] : memref<24x32xf32, #tpu.memory_space<vmem>>, vector<24x32xf32>
    %c0_1 = arith.constant 0 : index
    %c0_2 = arith.constant 0 : index
    %1 = vector.load %arg2[%c0_1, %c0_2] : memref<32x128xf32, #tpu.memory_space<vmem>>, vector<32x128xf32>
    %cst = arith.constant dense<0.000000e+00> : vector<24x128xf32>
    %2 = tpu.matmul %0, %1, %cst {dimension_numbers = #tpu.dot_dimension_numbers<[1], [0], [0], [1], [0, 0, 1, 1], [], []>} : vector<24x32xf32>, vector<32x128xf32>, vector<24x128xf32> -> vector<24x128xf32>
    %c0_3 = arith.constant 0 : index
    %c0_4 = arith.constant 0 : index
    %3 = vector.load %arg3[%c0_3, %c0_4] : memref<24x128xf32, #tpu.memory_space<vmem>>, vector<24x128xf32>
    tpu.vector_store %arg3[%c0_3, %c0_4], %2 {strides = array<i32>} : memref<24x128xf32, #tpu.memory_space<vmem>>, vector<24x128xf32>,
    return
  }
  func.func @transform_0(%arg0: i32) -> (i32, i32) {
    %c0_i32 = arith.constant 0 : i32
    %c0_i32_0 = arith.constant 0 : i32
    return %arg0, %c0_i32 : i32, i32
  }
  func.func @transform_1(%arg0: i32) -> (i32, i32) {
    %c0_i32 = arith.constant 0 : i32
    %c0_i32_0 = arith.constant 0 : i32
    %c0_i32_1 = arith.constant 0 : i32
    return %c0_i32, %c0_i32_0 : i32, i32
  }
  func.func @transform_2(%arg0: i32) -> (i32, i32) {
    %c0_i32 = arith.constant 0 : i32
    %c0_i32_0 = arith.constant 0 : i32
    return %arg0, %c0_i32 : i32, i32
  }
}

module attributes {stable_mosaic.version = 11 : i64} {
  func.func @_proj_kernel(%arg0: i32, %arg1: memref<32x16xf32, #tpu.memory_space<vmem>>, %arg2: memref<16x128xf32, #tpu.memory_space<vmem>>, %arg3: memref<32x128xf32, #tpu.memory_space<vmem>>) attributes {dimension_semantics = [#tpu.dimension_semantics<parallel>], iteration_bounds = array<i64: 1>, scalar_prefetch = 0 : i64, scratch_operands = 0 : i64, tpu.core_type = #tpu.core_type<tc>, window_params = [{transform_indices = @transform_0, window_bounds = array<i64: 32, 16>}, {pipeline_mode = #tpu.pipeline_mode<synchronous>, transform_indices = @transform_1, window_bounds = array<i64: 16, 128>}, {transform_indices = @transform_2, window_bounds = array<i64: 32, 128>}]} {
    %c0 = arith.constant 0 : index
    %c0_0 = arith.constant 0 : index
    %0 = vector.load %arg1[%c0, %c0_0] : memref<32x16xf32, #tpu.memory_space<vmem>>, vector<32x16xf32>
    %c0_1 = arith.constant 0 : index
    %c0_2 = arith.constant 0 : index
    %1 = vector.load %arg2[%c0_1, %c0_2] : memref<16x128xf32, #tpu.memory_space<vmem>>, vector<16x128xf32>
    %cst = arith.constant dense<0.000000e+00> : vector<32x128xf32>
    %2 = tpu.matmul %0, %1, %cst {dimension_numbers = #tpu.dot_dimension_numbers<[1], [0], [0], [1], [0, 0, 1, 1], [], []>} : vector<32x16xf32>, vector<16x128xf32>, vector<32x128xf32> -> vector<32x128xf32>
    %c0_3 = arith.constant 0 : index
    %c0_4 = arith.constant 0 : index
    %3 = vector.load %arg3[%c0_3, %c0_4] : memref<32x128xf32, #tpu.memory_space<vmem>>, vector<32x128xf32>
    tpu.vector_store %arg3[%c0_3, %c0_4], %2 {strides = array<i32>} : memref<32x128xf32, #tpu.memory_space<vmem>>, vector<32x128xf32>,
    return
  }
  func.func @transform_0(%arg0: i32) -> (i32, i32) {
    %c0_i32 = arith.constant 0 : i32
    %c0_i32_0 = arith.constant 0 : i32
    return %arg0, %c0_i32 : i32, i32
  }
  func.func @transform_1(%arg0: i32) -> (i32, i32) {
    %c0_i32 = arith.constant 0 : i32
    %c0_i32_0 = arith.constant 0 : i32
    %c0_i32_1 = arith.constant 0 : i32
    return %c0_i32, %c0_i32_0 : i32, i32
  }
  func.func @transform_2(%arg0: i32) -> (i32, i32) {
    %c0_i32 = arith.constant 0 : i32
    %c0_i32_0 = arith.constant 0 : i32
    return %arg0, %c0_i32 : i32, i32
  }
}

module attributes {stable_mosaic.version = 11 : i64} {
  func.func @_attn_kernel(%arg0: i32, %arg1: memref<24x32xf32, #tpu.memory_space<vmem>>, %arg2: memref<32x128xf32, #tpu.memory_space<vmem>>, %arg3: memref<4x32xf32, #tpu.memory_space<vmem>>, %arg4: memref<32x4xf32, #tpu.memory_space<vmem>>, %arg5: memref<1x32xf32, #tpu.memory_space<vmem>>, %arg6: memref<24x32xf32, #tpu.memory_space<vmem>>) attributes {dimension_semantics = [#tpu.dimension_semantics<parallel>], iteration_bounds = array<i64: 1>, scalar_prefetch = 0 : i64, scratch_operands = 0 : i64, tpu.core_type = #tpu.core_type<tc>, window_params = [{transform_indices = @transform_0, window_bounds = array<i64: 24, 32>}, {pipeline_mode = #tpu.pipeline_mode<synchronous>, transform_indices = @transform_1, window_bounds = array<i64: 32, 128>}, {pipeline_mode = #tpu.pipeline_mode<synchronous>, transform_indices = @transform_2, window_bounds = array<i64: 4, 32>}, {pipeline_mode = #tpu.pipeline_mode<synchronous>, transform_indices = @transform_3, window_bounds = array<i64: 32, 4>}, {pipeline_mode = #tpu.pipeline_mode<synchronous>, transform_indices = @transform_4, window_bounds = array<i64: 1, 32>}, {transform_indices = @transform_5, window_bounds = array<i64: 24, 32>}]} {
    %c24_i32 = arith.constant 24 : i32
    %0 = arith.muli %arg0, %c24_i32 : i32
    %1 = tpu.assume_multiple %0, 24 : i32
    %c0 = arith.constant 0 : index
    %c0_0 = arith.constant 0 : index
    %2 = vector.load %arg2[%c0, %c0_0] : memref<32x128xf32, #tpu.memory_space<vmem>>, vector<32x128xf32>
    %3 = vector.extract_strided_slice %2 {offsets = [0, 0], sizes = [32, 32], strides = [1, 1]} : vector<32x128xf32> to vector<32x32xf32>
    %4 = arith.index_cast %1 : i32 to index
    %c0_1 = arith.constant 0 : index
    %5 = vector.load %arg2[%4, %c0_1] : memref<32x128xf32, #tpu.memory_space<vmem>>, vector<24x128xf32>
    %6 = vector.extract_strided_slice %5 {offsets = [0, 0], sizes = [24, 32], strides = [1, 1]} : vector<24x128xf32> to vector<24x32xf32>
    %7 = vector.extract_strided_slice %5 {offsets = [0, 32], sizes = [24, 32], strides = [1, 1]} : vector<24x128xf32> to vector<24x32xf32>
    %c0_2 = arith.constant 0 : index
    %c0_3 = arith.constant 0 : index
    %8 = vector.load %arg1[%c0_2, %c0_3] : memref<24x32xf32, #tpu.memory_space<vmem>>, vector<24x32xf32>
    %c0_4 = arith.constant 0 : index
    %c0_5 = arith.constant 0 : index
    %9 = vector.load %arg3[%c0_4, %c0_5] : memref<4x32xf32, #tpu.memory_space<vmem>>, vector<4x32xf32>
    %cst = arith.constant dense<0.000000e+00> : vector<4x32xf32>
    %10 = tpu.matmul %9, %3, %cst {dimension_numbers = #tpu.dot_dimension_numbers<[1], [1], [0], [0], [0, 0, 1, 0], [], []>} : vector<4x32xf32>, vector<32x32xf32>, vector<4x32xf32> -> vector<4x32xf32>
    %c0_6 = arith.constant 0 : index
    %c0_7 = arith.constant 0 : index
    %11 = vector.load %arg4[%c0_6, %c0_7] : memref<32x4xf32, #tpu.memory_space<vmem>>, vector<32x4xf32>
    %cst_8 = arith.constant dense<0.000000e+00> : vector<24x4xf32>
    %12 = tpu.matmul %6, %11, %cst_8 {dimension_numbers = #tpu.dot_dimension_numbers<[1], [0], [0], [1], [0, 0, 1, 1], [], []>} : vector<24x32xf32>, vector<32x4xf32>, vector<24x4xf32> -> vector<24x4xf32>
    %13 = vector.extract_strided_slice %12 {offsets = [0, 0], sizes = [24, 1], strides = [1, 1]} : vector<24x4xf32> to vector<24x1xf32>
    %14 = vector.extract_strided_slice %10 {offsets = [0, 0], sizes = [1, 32], strides = [1, 1]} : vector<4x32xf32> to vector<1x32xf32>
    %15 = vector.broadcast %13 : vector<24x1xf32> to vector<24x32xf32>
    %16 = vector.broadcast %14 : vector<1x32xf32> to vector<24x32xf32>
    %17 = arith.addf %15, %16 : vector<24x32xf32>
    %cst_9 = arith.constant 0.000000e+00 : f32
    %18 = vector.broadcast %cst_9 : f32 to vector<24x32xf32>
    %19 = arith.cmpf ogt, %17, %18 : vector<24x32xf32>
    %cst_10 = arith.constant 2.000000e-01 : f32
    %20 = vector.broadcast %cst_10 : f32 to vector<24x32xf32>
    %21 = arith.mulf %20, %17 : vector<24x32xf32>
    %22 = arith.select %19, %17, %21 : vector<24x32xi1>, vector<24x32xf32>
    %cst_11 = arith.constant 0.000000e+00 : f32
    %23 = vector.broadcast %cst_11 : f32 to vector<24x32xf32>
    %24 = arith.cmpf ogt, %8, %23 : vector<24x32xf32>
    %cst_12 = arith.constant -1.000000e+30 : f32
    %25 = vector.broadcast %cst_12 : f32 to vector<24x32xf32>
    %26 = arith.select %24, %22, %25 : vector<24x32xi1>, vector<24x32xf32>
    %cst_13 = arith.constant dense<0xFF800000> : vector<24xf32>
    %27 = vector.multi_reduction <maximumf>, %26, %cst_13 [1] : vector<24x32xf32> to vector<24xf32>
    %28 = vector.shape_cast %27 : vector<24xf32> to vector<24x1xf32>
    %29 = vector.broadcast %28 : vector<24x1xf32> to vector<24x32xf32>
    %30 = arith.subf %26, %29 : vector<24x32xf32>
    %31 = math.exp %30 : vector<24x32xf32>
    %32 = arith.mulf %31, %8 : vector<24x32xf32>
    %cst_14 = arith.constant dense<0.000000e+00> : vector<24xf32>
    %33 = vector.multi_reduction <add>, %32, %cst_14 [1] : vector<24x32xf32> to vector<24xf32>
    %34 = vector.shape_cast %33 : vector<24xf32> to vector<24x1xf32>
    %cst_15 = arith.constant 9.99999971E-10 : f32
    %35 = vector.broadcast %cst_15 : f32 to vector<24x1xf32>
    %36 = arith.maximumf %34, %35 : vector<24x1xf32>
    %37 = tpu.reciprocal %36 {approx = true} : vector<24x1xf32> -> vector<24x1xf32>
    %38 = vector.broadcast %37 : vector<24x1xf32> to vector<24x32xf32>
    %39 = arith.mulf %32, %38 : vector<24x32xf32>
    %40 = vector.extract_strided_slice %3 {offsets = [0, 0], sizes = [32, 8], strides = [1, 1]} : vector<32x32xf32> to vector<32x8xf32>
    %41 = arith.truncf %39 : vector<24x32xf32> to vector<24x32xbf16>
    %42 = arith.truncf %40 : vector<32x8xf32> to vector<32x8xbf16>
    %cst_16 = arith.constant dense<0.000000e+00> : vector<24x8xf32>
    %43 = tpu.matmul %41, %42, %cst_16 {dimension_numbers = #tpu.dot_dimension_numbers<[1], [0], [0], [1], [0, 0, 1, 1], [], []>} : vector<24x32xbf16>, vector<32x8xbf16>, vector<24x8xf32> -> vector<24x8xf32>
    %44 = vector.extract_strided_slice %12 {offsets = [0, 1], sizes = [24, 1], strides = [1, 1]} : vector<24x4xf32> to vector<24x1xf32>
    %45 = vector.extract_strided_slice %10 {offsets = [1, 0], sizes = [1, 32], strides = [1, 1]} : vector<4x32xf32> to vector<1x32xf32>
    %46 = vector.broadcast %44 : vector<24x1xf32> to vector<24x32xf32>
    %47 = vector.broadcast %45 : vector<1x32xf32> to vector<24x32xf32>
    %48 = arith.addf %46, %47 : vector<24x32xf32>
    %cst_17 = arith.constant 0.000000e+00 : f32
    %49 = vector.broadcast %cst_17 : f32 to vector<24x32xf32>
    %50 = arith.cmpf ogt, %48, %49 : vector<24x32xf32>
    %cst_18 = arith.constant 2.000000e-01 : f32
    %51 = vector.broadcast %cst_18 : f32 to vector<24x32xf32>
    %52 = arith.mulf %51, %48 : vector<24x32xf32>
    %53 = arith.select %50, %48, %52 : vector<24x32xi1>, vector<24x32xf32>
    %cst_19 = arith.constant 0.000000e+00 : f32
    %54 = vector.broadcast %cst_19 : f32 to vector<24x32xf32>
    %55 = arith.cmpf ogt, %8, %54 : vector<24x32xf32>
    %cst_20 = arith.constant -1.000000e+30 : f32
    %56 = vector.broadcast %cst_20 : f32 to vector<24x32xf32>
    %57 = arith.select %55, %53, %56 : vector<24x32xi1>, vector<24x32xf32>
    %cst_21 = arith.constant dense<0xFF800000> : vector<24xf32>
    %58 = vector.multi_reduction <maximumf>, %57, %cst_21 [1] : vector<24x32xf32> to vector<24xf32>
    %59 = vector.shape_cast %58 : vector<24xf32> to vector<24x1xf32>
    %60 = vector.broadcast %59 : vector<24x1xf32> to vector<24x32xf32>
    %61 = arith.subf %57, %60 : vector<24x32xf32>
    %62 = math.exp %61 : vector<24x32xf32>
    %63 = arith.mulf %62, %8 : vector<24x32xf32>
    %cst_22 = arith.constant dense<0.000000e+00> : vector<24xf32>
    %64 = vector.multi_reduction <add>, %63, %cst_22 [1] : vector<24x32xf32> to vector<24xf32>
    %65 = vector.shape_cast %64 : vector<24xf32> to vector<24x1xf32>
    %cst_23 = arith.constant 9.99999971E-10 : f32
    %66 = vector.broadcast %cst_23 : f32 to vector<24x1xf32>
    %67 = arith.maximumf %65, %66 : vector<24x1xf32>
    %68 = tpu.reciprocal %67 {approx = true} : vector<24x1xf32> -> vector<24x1xf32>
    %69 = vector.broadcast %68 : vector<24x1xf32> to vector<24x32xf32>
    %70 = arith.mulf %63, %69 : vector<24x32xf32>
    %71 = vector.extract_strided_slice %3 {offsets = [0, 8], sizes = [32, 8], strides = [1, 1]} : vector<32x32xf32> to vector<32x8xf32>
    %72 = arith.truncf %70 : vector<24x32xf32> to vector<24x32xbf16>
    %73 = arith.truncf %71 : vector<32x8xf32> to vector<32x8xbf16>
    %cst_24 = arith.constant dense<0.000000e+00> : vector<24x8xf32>
    %74 = tpu.matmul %72, %73, %cst_24 {dimension_numbers = #tpu.dot_dimension_numbers<[1], [0], [0], [1], [0, 0, 1, 1], [], []>} : vector<24x32xbf16>, vector<32x8xbf16>, vector<24x8xf32> -> vector<24x8xf32>
    %75 = vector.extract_strided_slice %12 {offsets = [0, 2], sizes = [24, 1], strides = [1, 1]} : vector<24x4xf32> to vector<24x1xf32>
    %76 = vector.extract_strided_slice %10 {offsets = [2, 0], sizes = [1, 32], strides = [1, 1]} : vector<4x32xf32> to vector<1x32xf32>
    %77 = vector.broadcast %75 : vector<24x1xf32> to vector<24x32xf32>
    %78 = vector.broadcast %76 : vector<1x32xf32> to vector<24x32xf32>
    %79 = arith.addf %77, %78 : vector<24x32xf32>
    %cst_25 = arith.constant 0.000000e+00 : f32
    %80 = vector.broadcast %cst_25 : f32 to vector<24x32xf32>
    %81 = arith.cmpf ogt, %79, %80 : vector<24x32xf32>
    %cst_26 = arith.constant 2.000000e-01 : f32
    %82 = vector.broadcast %cst_26 : f32 to vector<24x32xf32>
    %83 = arith.mulf %82, %79 : vector<24x32xf32>
    %84 = arith.select %81, %79, %83 : vector<24x32xi1>, vector<24x32xf32>
    %cst_27 = arith.constant 0.000000e+00 : f32
    %85 = vector.broadcast %cst_27 : f32 to vector<24x32xf32>
    %86 = arith.cmpf ogt, %8, %85 : vector<24x32xf32>
    %cst_28 = arith.constant -1.000000e+30 : f32
    %87 = vector.broadcast %cst_28 : f32 to vector<24x32xf32>
    %88 = arith.select %86, %84, %87 : vector<24x32xi1>, vector<24x32xf32>
    %cst_29 = arith.constant dense<0xFF800000> : vector<24xf32>
    %89 = vector.multi_reduction <maximumf>, %88, %cst_29 [1] : vector<24x32xf32> to vector<24xf32>
    %90 = vector.shape_cast %89 : vector<24xf32> to vector<24x1xf32>
    %91 = vector.broadcast %90 : vector<24x1xf32> to vector<24x32xf32>
    %92 = arith.subf %88, %91 : vector<24x32xf32>
    %93 = math.exp %92 : vector<24x32xf32>
    %94 = arith.mulf %93, %8 : vector<24x32xf32>
    %cst_30 = arith.constant dense<0.000000e+00> : vector<24xf32>
    %95 = vector.multi_reduction <add>, %94, %cst_30 [1] : vector<24x32xf32> to vector<24xf32>
    %96 = vector.shape_cast %95 : vector<24xf32> to vector<24x1xf32>
    %cst_31 = arith.constant 9.99999971E-10 : f32
    %97 = vector.broadcast %cst_31 : f32 to vector<24x1xf32>
    %98 = arith.maximumf %96, %97 : vector<24x1xf32>
    %99 = tpu.reciprocal %98 {approx = true} : vector<24x1xf32> -> vector<24x1xf32>
    %100 = vector.broadcast %99 : vector<24x1xf32> to vector<24x32xf32>
    %101 = arith.mulf %94, %100 : vector<24x32xf32>
    %102 = vector.extract_strided_slice %3 {offsets = [0, 16], sizes = [32, 8], strides = [1, 1]} : vector<32x32xf32> to vector<32x8xf32>
    %103 = arith.truncf %101 : vector<24x32xf32> to vector<24x32xbf16>
    %104 = arith.truncf %102 : vector<32x8xf32> to vector<32x8xbf16>
    %cst_32 = arith.constant dense<0.000000e+00> : vector<24x8xf32>
    %105 = tpu.matmul %103, %104, %cst_32 {dimension_numbers = #tpu.dot_dimension_numbers<[1], [0], [0], [1], [0, 0, 1, 1], [], []>} : vector<24x32xbf16>, vector<32x8xbf16>, vector<24x8xf32> -> vector<24x8xf32>
    %106 = vector.extract_strided_slice %12 {offsets = [0, 3], sizes = [24, 1], strides = [1, 1]} : vector<24x4xf32> to vector<24x1xf32>
    %107 = vector.extract_strided_slice %10 {offsets = [3, 0], sizes = [1, 32], strides = [1, 1]} : vector<4x32xf32> to vector<1x32xf32>
    %108 = vector.broadcast %106 : vector<24x1xf32> to vector<24x32xf32>
    %109 = vector.broadcast %107 : vector<1x32xf32> to vector<24x32xf32>
    %110 = arith.addf %108, %109 : vector<24x32xf32>
    %cst_33 = arith.constant 0.000000e+00 : f32
    %111 = vector.broadcast %cst_33 : f32 to vector<24x32xf32>
    %112 = arith.cmpf ogt, %110, %111 : vector<24x32xf32>
    %cst_34 = arith.constant 2.000000e-01 : f32
    %113 = vector.broadcast %cst_34 : f32 to vector<24x32xf32>
    %114 = arith.mulf %113, %110 : vector<24x32xf32>
    %115 = arith.select %112, %110, %114 : vector<24x32xi1>, vector<24x32xf32>
    %cst_35 = arith.constant 0.000000e+00 : f32
    %116 = vector.broadcast %cst_35 : f32 to vector<24x32xf32>
    %117 = arith.cmpf ogt, %8, %116 : vector<24x32xf32>
    %cst_36 = arith.constant -1.000000e+30 : f32
    %118 = vector.broadcast %cst_36 : f32 to vector<24x32xf32>
    %119 = arith.select %117, %115, %118 : vector<24x32xi1>, vector<24x32xf32>
    %cst_37 = arith.constant dense<0xFF800000> : vector<24xf32>
    %120 = vector.multi_reduction <maximumf>, %119, %cst_37 [1] : vector<24x32xf32> to vector<24xf32>
    %121 = vector.shape_cast %120 : vector<24xf32> to vector<24x1xf32>
    %122 = vector.broadcast %121 : vector<24x1xf32> to vector<24x32xf32>
    %123 = arith.subf %119, %122 : vector<24x32xf32>
    %124 = math.exp %123 : vector<24x32xf32>
    %125 = arith.mulf %124, %8 : vector<24x32xf32>
    %cst_38 = arith.constant dense<0.000000e+00> : vector<24xf32>
    %126 = vector.multi_reduction <add>, %125, %cst_38 [1] : vector<24x32xf32> to vector<24xf32>
    %127 = vector.shape_cast %126 : vector<24xf32> to vector<24x1xf32>
    %cst_39 = arith.constant 9.99999971E-10 : f32
    %128 = vector.broadcast %cst_39 : f32 to vector<24x1xf32>
    %129 = arith.maximumf %127, %128 : vector<24x1xf32>
    %130 = tpu.reciprocal %129 {approx = true} : vector<24x1xf32> -> vector<24x1xf32>
    %131 = vector.broadcast %130 : vector<24x1xf32> to vector<24x32xf32>
    %132 = arith.mulf %125, %131 : vector<24x32xf32>
    %133 = vector.extract_strided_slice %3 {offsets = [0, 24], sizes = [32, 8], strides = [1, 1]} : vector<32x32xf32> to vector<32x8xf32>
    %134 = arith.truncf %132 : vector<24x32xf32> to vector<24x32xbf16>
    %135 = arith.truncf %133 : vector<32x8xf32> to vector<32x8xbf16>
    %cst_40 = arith.constant dense<0.000000e+00> : vector<24x8xf32>
    %136 = tpu.matmul %134, %135, %cst_40 {dimension_numbers = #tpu.dot_dimension_numbers<[1], [0], [0], [1], [0, 0, 1, 1], [], []>} : vector<24x32xbf16>, vector<32x8xbf16>, vector<24x8xf32> -> vector<24x8xf32>
    %137 = tpu.concatenate %43, %74, %105, %136 in 1 : vector<24x8xf32>, vector<24x8xf32>, vector<24x8xf32>, vector<24x8xf32> -> vector<24x32xf32>
    %138 = arith.addf %137, %7 : vector<24x32xf32>
    %c0_41 = arith.constant 0 : index
    %c0_42 = arith.constant 0 : index
    %139 = vector.load %arg5[%c0_41, %c0_42] : memref<1x32xf32, #tpu.memory_space<vmem>>, vector<1x32xf32>
    %140 = vector.broadcast %139 : vector<1x32xf32> to vector<24x32xf32>
    %141 = arith.addf %138, %140 : vector<24x32xf32>
    %cst_43 = arith.constant 0.000000e+00 : f32
    %142 = vector.broadcast %cst_43 : f32 to vector<24x32xf32>
    %143 = arith.cmpf ogt, %141, %142 : vector<24x32xf32>
    %cst_44 = arith.constant 0.000000e+00 : f32
    %144 = vector.broadcast %cst_44 : f32 to vector<24x32xf32>
    %145 = arith.minimumf %141, %144 : vector<24x32xf32>
    %146 = math.exp %145 : vector<24x32xf32>
    %cst_45 = arith.constant 1.000000e+00 : f32
    %147 = vector.broadcast %cst_45 : f32 to vector<24x32xf32>
    %148 = arith.subf %146, %147 : vector<24x32xf32>
    %149 = arith.select %143, %141, %148 : vector<24x32xi1>, vector<24x32xf32>
    %c0_46 = arith.constant 0 : index
    %c0_47 = arith.constant 0 : index
    %150 = vector.load %arg6[%c0_46, %c0_47] : memref<24x32xf32, #tpu.memory_space<vmem>>, vector<24x32xf32>
    tpu.vector_store %arg6[%c0_46, %c0_47], %149 {strides = array<i32>} : memref<24x32xf32, #tpu.memory_space<vmem>>, vector<24x32xf32>,
    return
  }
  func.func @transform_0(%arg0: i32) -> (i32, i32) {
    %c0_i32 = arith.constant 0 : i32
    %c0_i32_0 = arith.constant 0 : i32
    return %arg0, %c0_i32 : i32, i32
  }
  func.func @transform_1(%arg0: i32) -> (i32, i32) {
    %c0_i32 = arith.constant 0 : i32
    %c0_i32_0 = arith.constant 0 : i32
    %c0_i32_1 = arith.constant 0 : i32
    return %c0_i32, %c0_i32_0 : i32, i32
  }
  func.func @transform_2(%arg0: i32) -> (i32, i32) {
    %c0_i32 = arith.constant 0 : i32
    %c0_i32_0 = arith.constant 0 : i32
    %c0_i32_1 = arith.constant 0 : i32
    return %c0_i32, %c0_i32_0 : i32, i32
  }
  func.func @transform_3(%arg0: i32) -> (i32, i32) {
    %c0_i32 = arith.constant 0 : i32
    %c0_i32_0 = arith.constant 0 : i32
    %c0_i32_1 = arith.constant 0 : i32
    return %c0_i32, %c0_i32_0 : i32, i32
  }
  func.func @transform_4(%arg0: i32) -> (i32, i32) {
    %c0_i32 = arith.constant 0 : i32
    %c0_i32_0 = arith.constant 0 : i32
    %c0_i32_1 = arith.constant 0 : i32
    return %c0_i32, %c0_i32_0 : i32, i32
  }
  func.func @transform_5(%arg0: i32) -> (i32, i32) {
    %c0_i32 = arith.constant 0 : i32
    %c0_i32_0 = arith.constant 0 : i32
    return %arg0, %c0_i32 : i32, i32
  }
}

module attributes {stable_mosaic.version = 11 : i64} {
  func.func @_attn_kernel(%arg0: i32, %arg1: memref<16x24xf32, #tpu.memory_space<vmem>>, %arg2: memref<24x128xf32, #tpu.memory_space<vmem>>, %arg3: memref<4x32xf32, #tpu.memory_space<vmem>>, %arg4: memref<32x4xf32, #tpu.memory_space<vmem>>, %arg5: memref<1x32xf32, #tpu.memory_space<vmem>>, %arg6: memref<16x32xf32, #tpu.memory_space<vmem>>) attributes {dimension_semantics = [#tpu.dimension_semantics<parallel>], iteration_bounds = array<i64: 1>, scalar_prefetch = 0 : i64, scratch_operands = 0 : i64, tpu.core_type = #tpu.core_type<tc>, window_params = [{transform_indices = @transform_0, window_bounds = array<i64: 16, 24>}, {pipeline_mode = #tpu.pipeline_mode<synchronous>, transform_indices = @transform_1, window_bounds = array<i64: 24, 128>}, {pipeline_mode = #tpu.pipeline_mode<synchronous>, transform_indices = @transform_2, window_bounds = array<i64: 4, 32>}, {pipeline_mode = #tpu.pipeline_mode<synchronous>, transform_indices = @transform_3, window_bounds = array<i64: 32, 4>}, {pipeline_mode = #tpu.pipeline_mode<synchronous>, transform_indices = @transform_4, window_bounds = array<i64: 1, 32>}, {transform_indices = @transform_5, window_bounds = array<i64: 16, 32>}]} {
    %c16_i32 = arith.constant 16 : i32
    %0 = arith.muli %arg0, %c16_i32 : i32
    %1 = tpu.assume_multiple %0, 16 : i32
    %c0 = arith.constant 0 : index
    %c0_0 = arith.constant 0 : index
    %2 = vector.load %arg2[%c0, %c0_0] : memref<24x128xf32, #tpu.memory_space<vmem>>, vector<24x128xf32>
    %3 = vector.extract_strided_slice %2 {offsets = [0, 0], sizes = [24, 32], strides = [1, 1]} : vector<24x128xf32> to vector<24x32xf32>
    %4 = arith.index_cast %1 : i32 to index
    %c0_1 = arith.constant 0 : index
    %5 = vector.load %arg2[%4, %c0_1] : memref<24x128xf32, #tpu.memory_space<vmem>>, vector<16x128xf32>
    %6 = vector.extract_strided_slice %5 {offsets = [0, 0], sizes = [16, 32], strides = [1, 1]} : vector<16x128xf32> to vector<16x32xf32>
    %7 = vector.extract_strided_slice %5 {offsets = [0, 32], sizes = [16, 32], strides = [1, 1]} : vector<16x128xf32> to vector<16x32xf32>
    %c0_2 = arith.constant 0 : index
    %c0_3 = arith.constant 0 : index
    %8 = vector.load %arg1[%c0_2, %c0_3] : memref<16x24xf32, #tpu.memory_space<vmem>>, vector<16x24xf32>
    %c0_4 = arith.constant 0 : index
    %c0_5 = arith.constant 0 : index
    %9 = vector.load %arg3[%c0_4, %c0_5] : memref<4x32xf32, #tpu.memory_space<vmem>>, vector<4x32xf32>
    %cst = arith.constant dense<0.000000e+00> : vector<4x24xf32>
    %10 = tpu.matmul %9, %3, %cst {dimension_numbers = #tpu.dot_dimension_numbers<[1], [1], [0], [0], [0, 0, 1, 0], [], []>} : vector<4x32xf32>, vector<24x32xf32>, vector<4x24xf32> -> vector<4x24xf32>
    %c0_6 = arith.constant 0 : index
    %c0_7 = arith.constant 0 : index
    %11 = vector.load %arg4[%c0_6, %c0_7] : memref<32x4xf32, #tpu.memory_space<vmem>>, vector<32x4xf32>
    %cst_8 = arith.constant dense<0.000000e+00> : vector<16x4xf32>
    %12 = tpu.matmul %6, %11, %cst_8 {dimension_numbers = #tpu.dot_dimension_numbers<[1], [0], [0], [1], [0, 0, 1, 1], [], []>} : vector<16x32xf32>, vector<32x4xf32>, vector<16x4xf32> -> vector<16x4xf32>
    %13 = vector.extract_strided_slice %12 {offsets = [0, 0], sizes = [16, 1], strides = [1, 1]} : vector<16x4xf32> to vector<16x1xf32>
    %14 = vector.extract_strided_slice %10 {offsets = [0, 0], sizes = [1, 24], strides = [1, 1]} : vector<4x24xf32> to vector<1x24xf32>
    %15 = vector.broadcast %13 : vector<16x1xf32> to vector<16x24xf32>
    %16 = vector.broadcast %14 : vector<1x24xf32> to vector<16x24xf32>
    %17 = arith.addf %15, %16 : vector<16x24xf32>
    %cst_9 = arith.constant 0.000000e+00 : f32
    %18 = vector.broadcast %cst_9 : f32 to vector<16x24xf32>
    %19 = arith.cmpf ogt, %17, %18 : vector<16x24xf32>
    %cst_10 = arith.constant 2.000000e-01 : f32
    %20 = vector.broadcast %cst_10 : f32 to vector<16x24xf32>
    %21 = arith.mulf %20, %17 : vector<16x24xf32>
    %22 = arith.select %19, %17, %21 : vector<16x24xi1>, vector<16x24xf32>
    %cst_11 = arith.constant 0.000000e+00 : f32
    %23 = vector.broadcast %cst_11 : f32 to vector<16x24xf32>
    %24 = arith.cmpf ogt, %8, %23 : vector<16x24xf32>
    %cst_12 = arith.constant -1.000000e+30 : f32
    %25 = vector.broadcast %cst_12 : f32 to vector<16x24xf32>
    %26 = arith.select %24, %22, %25 : vector<16x24xi1>, vector<16x24xf32>
    %cst_13 = arith.constant dense<0xFF800000> : vector<16xf32>
    %27 = vector.multi_reduction <maximumf>, %26, %cst_13 [1] : vector<16x24xf32> to vector<16xf32>
    %28 = vector.shape_cast %27 : vector<16xf32> to vector<16x1xf32>
    %29 = vector.broadcast %28 : vector<16x1xf32> to vector<16x24xf32>
    %30 = arith.subf %26, %29 : vector<16x24xf32>
    %31 = math.exp %30 : vector<16x24xf32>
    %32 = arith.mulf %31, %8 : vector<16x24xf32>
    %cst_14 = arith.constant dense<0.000000e+00> : vector<16xf32>
    %33 = vector.multi_reduction <add>, %32, %cst_14 [1] : vector<16x24xf32> to vector<16xf32>
    %34 = vector.shape_cast %33 : vector<16xf32> to vector<16x1xf32>
    %cst_15 = arith.constant 9.99999971E-10 : f32
    %35 = vector.broadcast %cst_15 : f32 to vector<16x1xf32>
    %36 = arith.maximumf %34, %35 : vector<16x1xf32>
    %37 = tpu.reciprocal %36 {approx = true} : vector<16x1xf32> -> vector<16x1xf32>
    %38 = vector.broadcast %37 : vector<16x1xf32> to vector<16x24xf32>
    %39 = arith.mulf %32, %38 : vector<16x24xf32>
    %40 = vector.extract_strided_slice %3 {offsets = [0, 0], sizes = [24, 8], strides = [1, 1]} : vector<24x32xf32> to vector<24x8xf32>
    %41 = arith.truncf %39 : vector<16x24xf32> to vector<16x24xbf16>
    %42 = arith.truncf %40 : vector<24x8xf32> to vector<24x8xbf16>
    %cst_16 = arith.constant dense<0.000000e+00> : vector<16x8xf32>
    %43 = tpu.matmul %41, %42, %cst_16 {dimension_numbers = #tpu.dot_dimension_numbers<[1], [0], [0], [1], [0, 0, 1, 1], [], []>} : vector<16x24xbf16>, vector<24x8xbf16>, vector<16x8xf32> -> vector<16x8xf32>
    %44 = vector.extract_strided_slice %12 {offsets = [0, 1], sizes = [16, 1], strides = [1, 1]} : vector<16x4xf32> to vector<16x1xf32>
    %45 = vector.extract_strided_slice %10 {offsets = [1, 0], sizes = [1, 24], strides = [1, 1]} : vector<4x24xf32> to vector<1x24xf32>
    %46 = vector.broadcast %44 : vector<16x1xf32> to vector<16x24xf32>
    %47 = vector.broadcast %45 : vector<1x24xf32> to vector<16x24xf32>
    %48 = arith.addf %46, %47 : vector<16x24xf32>
    %cst_17 = arith.constant 0.000000e+00 : f32
    %49 = vector.broadcast %cst_17 : f32 to vector<16x24xf32>
    %50 = arith.cmpf ogt, %48, %49 : vector<16x24xf32>
    %cst_18 = arith.constant 2.000000e-01 : f32
    %51 = vector.broadcast %cst_18 : f32 to vector<16x24xf32>
    %52 = arith.mulf %51, %48 : vector<16x24xf32>
    %53 = arith.select %50, %48, %52 : vector<16x24xi1>, vector<16x24xf32>
    %cst_19 = arith.constant 0.000000e+00 : f32
    %54 = vector.broadcast %cst_19 : f32 to vector<16x24xf32>
    %55 = arith.cmpf ogt, %8, %54 : vector<16x24xf32>
    %cst_20 = arith.constant -1.000000e+30 : f32
    %56 = vector.broadcast %cst_20 : f32 to vector<16x24xf32>
    %57 = arith.select %55, %53, %56 : vector<16x24xi1>, vector<16x24xf32>
    %cst_21 = arith.constant dense<0xFF800000> : vector<16xf32>
    %58 = vector.multi_reduction <maximumf>, %57, %cst_21 [1] : vector<16x24xf32> to vector<16xf32>
    %59 = vector.shape_cast %58 : vector<16xf32> to vector<16x1xf32>
    %60 = vector.broadcast %59 : vector<16x1xf32> to vector<16x24xf32>
    %61 = arith.subf %57, %60 : vector<16x24xf32>
    %62 = math.exp %61 : vector<16x24xf32>
    %63 = arith.mulf %62, %8 : vector<16x24xf32>
    %cst_22 = arith.constant dense<0.000000e+00> : vector<16xf32>
    %64 = vector.multi_reduction <add>, %63, %cst_22 [1] : vector<16x24xf32> to vector<16xf32>
    %65 = vector.shape_cast %64 : vector<16xf32> to vector<16x1xf32>
    %cst_23 = arith.constant 9.99999971E-10 : f32
    %66 = vector.broadcast %cst_23 : f32 to vector<16x1xf32>
    %67 = arith.maximumf %65, %66 : vector<16x1xf32>
    %68 = tpu.reciprocal %67 {approx = true} : vector<16x1xf32> -> vector<16x1xf32>
    %69 = vector.broadcast %68 : vector<16x1xf32> to vector<16x24xf32>
    %70 = arith.mulf %63, %69 : vector<16x24xf32>
    %71 = vector.extract_strided_slice %3 {offsets = [0, 8], sizes = [24, 8], strides = [1, 1]} : vector<24x32xf32> to vector<24x8xf32>
    %72 = arith.truncf %70 : vector<16x24xf32> to vector<16x24xbf16>
    %73 = arith.truncf %71 : vector<24x8xf32> to vector<24x8xbf16>
    %cst_24 = arith.constant dense<0.000000e+00> : vector<16x8xf32>
    %74 = tpu.matmul %72, %73, %cst_24 {dimension_numbers = #tpu.dot_dimension_numbers<[1], [0], [0], [1], [0, 0, 1, 1], [], []>} : vector<16x24xbf16>, vector<24x8xbf16>, vector<16x8xf32> -> vector<16x8xf32>
    %75 = vector.extract_strided_slice %12 {offsets = [0, 2], sizes = [16, 1], strides = [1, 1]} : vector<16x4xf32> to vector<16x1xf32>
    %76 = vector.extract_strided_slice %10 {offsets = [2, 0], sizes = [1, 24], strides = [1, 1]} : vector<4x24xf32> to vector<1x24xf32>
    %77 = vector.broadcast %75 : vector<16x1xf32> to vector<16x24xf32>
    %78 = vector.broadcast %76 : vector<1x24xf32> to vector<16x24xf32>
    %79 = arith.addf %77, %78 : vector<16x24xf32>
    %cst_25 = arith.constant 0.000000e+00 : f32
    %80 = vector.broadcast %cst_25 : f32 to vector<16x24xf32>
    %81 = arith.cmpf ogt, %79, %80 : vector<16x24xf32>
    %cst_26 = arith.constant 2.000000e-01 : f32
    %82 = vector.broadcast %cst_26 : f32 to vector<16x24xf32>
    %83 = arith.mulf %82, %79 : vector<16x24xf32>
    %84 = arith.select %81, %79, %83 : vector<16x24xi1>, vector<16x24xf32>
    %cst_27 = arith.constant 0.000000e+00 : f32
    %85 = vector.broadcast %cst_27 : f32 to vector<16x24xf32>
    %86 = arith.cmpf ogt, %8, %85 : vector<16x24xf32>
    %cst_28 = arith.constant -1.000000e+30 : f32
    %87 = vector.broadcast %cst_28 : f32 to vector<16x24xf32>
    %88 = arith.select %86, %84, %87 : vector<16x24xi1>, vector<16x24xf32>
    %cst_29 = arith.constant dense<0xFF800000> : vector<16xf32>
    %89 = vector.multi_reduction <maximumf>, %88, %cst_29 [1] : vector<16x24xf32> to vector<16xf32>
    %90 = vector.shape_cast %89 : vector<16xf32> to vector<16x1xf32>
    %91 = vector.broadcast %90 : vector<16x1xf32> to vector<16x24xf32>
    %92 = arith.subf %88, %91 : vector<16x24xf32>
    %93 = math.exp %92 : vector<16x24xf32>
    %94 = arith.mulf %93, %8 : vector<16x24xf32>
    %cst_30 = arith.constant dense<0.000000e+00> : vector<16xf32>
    %95 = vector.multi_reduction <add>, %94, %cst_30 [1] : vector<16x24xf32> to vector<16xf32>
    %96 = vector.shape_cast %95 : vector<16xf32> to vector<16x1xf32>
    %cst_31 = arith.constant 9.99999971E-10 : f32
    %97 = vector.broadcast %cst_31 : f32 to vector<16x1xf32>
    %98 = arith.maximumf %96, %97 : vector<16x1xf32>
    %99 = tpu.reciprocal %98 {approx = true} : vector<16x1xf32> -> vector<16x1xf32>
    %100 = vector.broadcast %99 : vector<16x1xf32> to vector<16x24xf32>
    %101 = arith.mulf %94, %100 : vector<16x24xf32>
    %102 = vector.extract_strided_slice %3 {offsets = [0, 16], sizes = [24, 8], strides = [1, 1]} : vector<24x32xf32> to vector<24x8xf32>
    %103 = arith.truncf %101 : vector<16x24xf32> to vector<16x24xbf16>
    %104 = arith.truncf %102 : vector<24x8xf32> to vector<24x8xbf16>
    %cst_32 = arith.constant dense<0.000000e+00> : vector<16x8xf32>
    %105 = tpu.matmul %103, %104, %cst_32 {dimension_numbers = #tpu.dot_dimension_numbers<[1], [0], [0], [1], [0, 0, 1, 1], [], []>} : vector<16x24xbf16>, vector<24x8xbf16>, vector<16x8xf32> -> vector<16x8xf32>
    %106 = vector.extract_strided_slice %12 {offsets = [0, 3], sizes = [16, 1], strides = [1, 1]} : vector<16x4xf32> to vector<16x1xf32>
    %107 = vector.extract_strided_slice %10 {offsets = [3, 0], sizes = [1, 24], strides = [1, 1]} : vector<4x24xf32> to vector<1x24xf32>
    %108 = vector.broadcast %106 : vector<16x1xf32> to vector<16x24xf32>
    %109 = vector.broadcast %107 : vector<1x24xf32> to vector<16x24xf32>
    %110 = arith.addf %108, %109 : vector<16x24xf32>
    %cst_33 = arith.constant 0.000000e+00 : f32
    %111 = vector.broadcast %cst_33 : f32 to vector<16x24xf32>
    %112 = arith.cmpf ogt, %110, %111 : vector<16x24xf32>
    %cst_34 = arith.constant 2.000000e-01 : f32
    %113 = vector.broadcast %cst_34 : f32 to vector<16x24xf32>
    %114 = arith.mulf %113, %110 : vector<16x24xf32>
    %115 = arith.select %112, %110, %114 : vector<16x24xi1>, vector<16x24xf32>
    %cst_35 = arith.constant 0.000000e+00 : f32
    %116 = vector.broadcast %cst_35 : f32 to vector<16x24xf32>
    %117 = arith.cmpf ogt, %8, %116 : vector<16x24xf32>
    %cst_36 = arith.constant -1.000000e+30 : f32
    %118 = vector.broadcast %cst_36 : f32 to vector<16x24xf32>
    %119 = arith.select %117, %115, %118 : vector<16x24xi1>, vector<16x24xf32>
    %cst_37 = arith.constant dense<0xFF800000> : vector<16xf32>
    %120 = vector.multi_reduction <maximumf>, %119, %cst_37 [1] : vector<16x24xf32> to vector<16xf32>
    %121 = vector.shape_cast %120 : vector<16xf32> to vector<16x1xf32>
    %122 = vector.broadcast %121 : vector<16x1xf32> to vector<16x24xf32>
    %123 = arith.subf %119, %122 : vector<16x24xf32>
    %124 = math.exp %123 : vector<16x24xf32>
    %125 = arith.mulf %124, %8 : vector<16x24xf32>
    %cst_38 = arith.constant dense<0.000000e+00> : vector<16xf32>
    %126 = vector.multi_reduction <add>, %125, %cst_38 [1] : vector<16x24xf32> to vector<16xf32>
    %127 = vector.shape_cast %126 : vector<16xf32> to vector<16x1xf32>
    %cst_39 = arith.constant 9.99999971E-10 : f32
    %128 = vector.broadcast %cst_39 : f32 to vector<16x1xf32>
    %129 = arith.maximumf %127, %128 : vector<16x1xf32>
    %130 = tpu.reciprocal %129 {approx = true} : vector<16x1xf32> -> vector<16x1xf32>
    %131 = vector.broadcast %130 : vector<16x1xf32> to vector<16x24xf32>
    %132 = arith.mulf %125, %131 : vector<16x24xf32>
    %133 = vector.extract_strided_slice %3 {offsets = [0, 24], sizes = [24, 8], strides = [1, 1]} : vector<24x32xf32> to vector<24x8xf32>
    %134 = arith.truncf %132 : vector<16x24xf32> to vector<16x24xbf16>
    %135 = arith.truncf %133 : vector<24x8xf32> to vector<24x8xbf16>
    %cst_40 = arith.constant dense<0.000000e+00> : vector<16x8xf32>
    %136 = tpu.matmul %134, %135, %cst_40 {dimension_numbers = #tpu.dot_dimension_numbers<[1], [0], [0], [1], [0, 0, 1, 1], [], []>} : vector<16x24xbf16>, vector<24x8xbf16>, vector<16x8xf32> -> vector<16x8xf32>
    %137 = tpu.concatenate %43, %74, %105, %136 in 1 : vector<16x8xf32>, vector<16x8xf32>, vector<16x8xf32>, vector<16x8xf32> -> vector<16x32xf32>
    %138 = arith.addf %137, %7 : vector<16x32xf32>
    %c0_41 = arith.constant 0 : index
    %c0_42 = arith.constant 0 : index
    %139 = vector.load %arg5[%c0_41, %c0_42] : memref<1x32xf32, #tpu.memory_space<vmem>>, vector<1x32xf32>
    %140 = vector.broadcast %139 : vector<1x32xf32> to vector<16x32xf32>
    %141 = arith.addf %138, %140 : vector<16x32xf32>
    %cst_43 = arith.constant 0.000000e+00 : f32
    %142 = vector.broadcast %cst_43 : f32 to vector<16x32xf32>
    %143 = arith.cmpf ogt, %141, %142 : vector<16x32xf32>
    %cst_44 = arith.constant 0.000000e+00 : f32
    %144 = vector.broadcast %cst_44 : f32 to vector<16x32xf32>
    %145 = arith.minimumf %141, %144 : vector<16x32xf32>
    %146 = math.exp %145 : vector<16x32xf32>
    %cst_45 = arith.constant 1.000000e+00 : f32
    %147 = vector.broadcast %cst_45 : f32 to vector<16x32xf32>
    %148 = arith.subf %146, %147 : vector<16x32xf32>
    %149 = arith.select %143, %141, %148 : vector<16x32xi1>, vector<16x32xf32>
    %c0_46 = arith.constant 0 : index
    %c0_47 = arith.constant 0 : index
    %150 = vector.load %arg6[%c0_46, %c0_47] : memref<16x32xf32, #tpu.memory_space<vmem>>, vector<16x32xf32>
    tpu.vector_store %arg6[%c0_46, %c0_47], %149 {strides = array<i32>} : memref<16x32xf32, #tpu.memory_space<vmem>>, vector<16x32xf32>,
    return
  }
  func.func @transform_0(%arg0: i32) -> (i32, i32) {
    %c0_i32 = arith.constant 0 : i32
    %c0_i32_0 = arith.constant 0 : i32
    return %arg0, %c0_i32 : i32, i32
  }
  func.func @transform_1(%arg0: i32) -> (i32, i32) {
    %c0_i32 = arith.constant 0 : i32
    %c0_i32_0 = arith.constant 0 : i32
    %c0_i32_1 = arith.constant 0 : i32
    return %c0_i32, %c0_i32_0 : i32, i32
  }
  func.func @transform_2(%arg0: i32) -> (i32, i32) {
    %c0_i32 = arith.constant 0 : i32
    %c0_i32_0 = arith.constant 0 : i32
    %c0_i32_1 = arith.constant 0 : i32
    return %c0_i32, %c0_i32_0 : i32, i32
  }
  func.func @transform_3(%arg0: i32) -> (i32, i32) {
    %c0_i32 = arith.constant 0 : i32
    %c0_i32_0 = arith.constant 0 : i32
    %c0_i32_1 = arith.constant 0 : i32
    return %c0_i32, %c0_i32_0 : i32, i32
  }
  func.func @transform_4(%arg0: i32) -> (i32, i32) {
    %c0_i32 = arith.constant 0 : i32
    %c0_i32_0 = arith.constant 0 : i32
    %c0_i32_1 = arith.constant 0 : i32
    return %c0_i32, %c0_i32_0 : i32, i32
  }
  func.func @transform_5(%arg0: i32) -> (i32, i32) {
    %c0_i32 = arith.constant 0 : i32
    %c0_i32_0 = arith.constant 0 : i32
    return %arg0, %c0_i32 : i32, i32
  }
}

module attributes {stable_mosaic.version = 11 : i64} {
  func.func @_proj_kernel(%arg0: i32, %arg1: memref<16x32xf32, #tpu.memory_space<vmem>>, %arg2: memref<32x128xf32, #tpu.memory_space<vmem>>, %arg3: memref<16x128xf32, #tpu.memory_space<vmem>>) attributes {dimension_semantics = [#tpu.dimension_semantics<parallel>], iteration_bounds = array<i64: 1>, scalar_prefetch = 0 : i64, scratch_operands = 0 : i64, tpu.core_type = #tpu.core_type<tc>, window_params = [{transform_indices = @transform_0, window_bounds = array<i64: 16, 32>}, {pipeline_mode = #tpu.pipeline_mode<synchronous>, transform_indices = @transform_1, window_bounds = array<i64: 32, 128>}, {transform_indices = @transform_2, window_bounds = array<i64: 16, 128>}]} {
    %c0 = arith.constant 0 : index
    %c0_0 = arith.constant 0 : index
    %0 = vector.load %arg1[%c0, %c0_0] : memref<16x32xf32, #tpu.memory_space<vmem>>, vector<16x32xf32>
    %c0_1 = arith.constant 0 : index
    %c0_2 = arith.constant 0 : index
    %1 = vector.load %arg2[%c0_1, %c0_2] : memref<32x128xf32, #tpu.memory_space<vmem>>, vector<32x128xf32>
    %cst = arith.constant dense<0.000000e+00> : vector<16x128xf32>
    %2 = tpu.matmul %0, %1, %cst {dimension_numbers = #tpu.dot_dimension_numbers<[1], [0], [0], [1], [0, 0, 1, 1], [], []>} : vector<16x32xf32>, vector<32x128xf32>, vector<16x128xf32> -> vector<16x128xf32>
    %c0_3 = arith.constant 0 : index
    %c0_4 = arith.constant 0 : index
    %3 = vector.load %arg3[%c0_3, %c0_4] : memref<16x128xf32, #tpu.memory_space<vmem>>, vector<16x128xf32>
    tpu.vector_store %arg3[%c0_3, %c0_4], %2 {strides = array<i32>} : memref<16x128xf32, #tpu.memory_space<vmem>>, vector<16x128xf32>,
    return
  }
  func.func @transform_0(%arg0: i32) -> (i32, i32) {
    %c0_i32 = arith.constant 0 : i32
    %c0_i32_0 = arith.constant 0 : i32
    return %arg0, %c0_i32 : i32, i32
  }
  func.func @transform_1(%arg0: i32) -> (i32, i32) {
    %c0_i32 = arith.constant 0 : i32
    %c0_i32_0 = arith.constant 0 : i32
    %c0_i32_1 = arith.constant 0 : i32
    return %c0_i32, %c0_i32_0 : i32, i32
  }
  func.func @transform_2(%arg0: i32) -> (i32, i32) {
    %c0_i32 = arith.constant 0 : i32
    %c0_i32_0 = arith.constant 0 : i32
    return %arg0, %c0_i32 : i32, i32
  }
}

module attributes {stable_mosaic.version = 11 : i64} {
  func.func @_attn_kernel(%arg0: i32, %arg1: memref<8x16xf32, #tpu.memory_space<vmem>>, %arg2: memref<16x128xf32, #tpu.memory_space<vmem>>, %arg3: memref<4x32xf32, #tpu.memory_space<vmem>>, %arg4: memref<32x4xf32, #tpu.memory_space<vmem>>, %arg5: memref<1x8xf32, #tpu.memory_space<vmem>>, %arg6: memref<8x8xf32, #tpu.memory_space<vmem>>) attributes {dimension_semantics = [#tpu.dimension_semantics<parallel>], iteration_bounds = array<i64: 1>, scalar_prefetch = 0 : i64, scratch_operands = 0 : i64, tpu.core_type = #tpu.core_type<tc>, window_params = [{transform_indices = @transform_0, window_bounds = array<i64: 8, 16>}, {pipeline_mode = #tpu.pipeline_mode<synchronous>, transform_indices = @transform_1, window_bounds = array<i64: 16, 128>}, {pipeline_mode = #tpu.pipeline_mode<synchronous>, transform_indices = @transform_2, window_bounds = array<i64: 4, 32>}, {pipeline_mode = #tpu.pipeline_mode<synchronous>, transform_indices = @transform_3, window_bounds = array<i64: 32, 4>}, {pipeline_mode = #tpu.pipeline_mode<synchronous>, transform_indices = @transform_4, window_bounds = array<i64: 1, 8>}, {transform_indices = @transform_5, window_bounds = array<i64: 8, 8>}]} {
    %c8_i32 = arith.constant 8 : i32
    %0 = arith.muli %arg0, %c8_i32 : i32
    %1 = tpu.assume_multiple %0, 8 : i32
    %c0 = arith.constant 0 : index
    %c0_0 = arith.constant 0 : index
    %2 = vector.load %arg2[%c0, %c0_0] : memref<16x128xf32, #tpu.memory_space<vmem>>, vector<16x128xf32>
    %3 = vector.extract_strided_slice %2 {offsets = [0, 0], sizes = [16, 32], strides = [1, 1]} : vector<16x128xf32> to vector<16x32xf32>
    %4 = arith.index_cast %1 : i32 to index
    %c0_1 = arith.constant 0 : index
    %5 = vector.load %arg2[%4, %c0_1] : memref<16x128xf32, #tpu.memory_space<vmem>>, vector<8x128xf32>
    %6 = vector.extract_strided_slice %5 {offsets = [0, 0], sizes = [8, 32], strides = [1, 1]} : vector<8x128xf32> to vector<8x32xf32>
    %7 = vector.extract_strided_slice %5 {offsets = [0, 32], sizes = [8, 8], strides = [1, 1]} : vector<8x128xf32> to vector<8x8xf32>
    %c0_2 = arith.constant 0 : index
    %c0_3 = arith.constant 0 : index
    %8 = vector.load %arg1[%c0_2, %c0_3] : memref<8x16xf32, #tpu.memory_space<vmem>>, vector<8x16xf32>
    %c0_4 = arith.constant 0 : index
    %c0_5 = arith.constant 0 : index
    %9 = vector.load %arg3[%c0_4, %c0_5] : memref<4x32xf32, #tpu.memory_space<vmem>>, vector<4x32xf32>
    %cst = arith.constant dense<0.000000e+00> : vector<4x16xf32>
    %10 = tpu.matmul %9, %3, %cst {dimension_numbers = #tpu.dot_dimension_numbers<[1], [1], [0], [0], [0, 0, 1, 0], [], []>} : vector<4x32xf32>, vector<16x32xf32>, vector<4x16xf32> -> vector<4x16xf32>
    %c0_6 = arith.constant 0 : index
    %c0_7 = arith.constant 0 : index
    %11 = vector.load %arg4[%c0_6, %c0_7] : memref<32x4xf32, #tpu.memory_space<vmem>>, vector<32x4xf32>
    %cst_8 = arith.constant dense<0.000000e+00> : vector<8x4xf32>
    %12 = tpu.matmul %6, %11, %cst_8 {dimension_numbers = #tpu.dot_dimension_numbers<[1], [0], [0], [1], [0, 0, 1, 1], [], []>} : vector<8x32xf32>, vector<32x4xf32>, vector<8x4xf32> -> vector<8x4xf32>
    %cst_9 = arith.constant 0.000000e+00 : f32
    %13 = vector.broadcast %cst_9 : f32 to vector<8x8xf32>
    %14 = vector.extract_strided_slice %12 {offsets = [0, 0], sizes = [8, 1], strides = [1, 1]} : vector<8x4xf32> to vector<8x1xf32>
    %15 = vector.extract_strided_slice %10 {offsets = [0, 0], sizes = [1, 16], strides = [1, 1]} : vector<4x16xf32> to vector<1x16xf32>
    %16 = vector.broadcast %14 : vector<8x1xf32> to vector<8x16xf32>
    %17 = vector.broadcast %15 : vector<1x16xf32> to vector<8x16xf32>
    %18 = arith.addf %16, %17 : vector<8x16xf32>
    %cst_10 = arith.constant 0.000000e+00 : f32
    %19 = vector.broadcast %cst_10 : f32 to vector<8x16xf32>
    %20 = arith.cmpf ogt, %18, %19 : vector<8x16xf32>
    %cst_11 = arith.constant 2.000000e-01 : f32
    %21 = vector.broadcast %cst_11 : f32 to vector<8x16xf32>
    %22 = arith.mulf %21, %18 : vector<8x16xf32>
    %23 = arith.select %20, %18, %22 : vector<8x16xi1>, vector<8x16xf32>
    %cst_12 = arith.constant 0.000000e+00 : f32
    %24 = vector.broadcast %cst_12 : f32 to vector<8x16xf32>
    %25 = arith.cmpf ogt, %8, %24 : vector<8x16xf32>
    %cst_13 = arith.constant -1.000000e+30 : f32
    %26 = vector.broadcast %cst_13 : f32 to vector<8x16xf32>
    %27 = arith.select %25, %23, %26 : vector<8x16xi1>, vector<8x16xf32>
    %cst_14 = arith.constant dense<0xFF800000> : vector<8xf32>
    %28 = vector.multi_reduction <maximumf>, %27, %cst_14 [1] : vector<8x16xf32> to vector<8xf32>
    %29 = vector.shape_cast %28 : vector<8xf32> to vector<8x1xf32>
    %30 = vector.broadcast %29 : vector<8x1xf32> to vector<8x16xf32>
    %31 = arith.subf %27, %30 : vector<8x16xf32>
    %32 = math.exp %31 : vector<8x16xf32>
    %33 = arith.mulf %32, %8 : vector<8x16xf32>
    %cst_15 = arith.constant dense<0.000000e+00> : vector<8xf32>
    %34 = vector.multi_reduction <add>, %33, %cst_15 [1] : vector<8x16xf32> to vector<8xf32>
    %35 = vector.shape_cast %34 : vector<8xf32> to vector<8x1xf32>
    %cst_16 = arith.constant 9.99999971E-10 : f32
    %36 = vector.broadcast %cst_16 : f32 to vector<8x1xf32>
    %37 = arith.maximumf %35, %36 : vector<8x1xf32>
    %38 = tpu.reciprocal %37 {approx = true} : vector<8x1xf32> -> vector<8x1xf32>
    %39 = vector.broadcast %38 : vector<8x1xf32> to vector<8x16xf32>
    %40 = arith.mulf %33, %39 : vector<8x16xf32>
    %41 = vector.extract_strided_slice %3 {offsets = [0, 0], sizes = [16, 8], strides = [1, 1]} : vector<16x32xf32> to vector<16x8xf32>
    %42 = arith.truncf %40 : vector<8x16xf32> to vector<8x16xbf16>
    %43 = arith.truncf %41 : vector<16x8xf32> to vector<16x8xbf16>
    %cst_17 = arith.constant dense<0.000000e+00> : vector<8x8xf32>
    %44 = tpu.matmul %42, %43, %cst_17 {dimension_numbers = #tpu.dot_dimension_numbers<[1], [0], [0], [1], [0, 0, 1, 1], [], []>} : vector<8x16xbf16>, vector<16x8xbf16>, vector<8x8xf32> -> vector<8x8xf32>
    %45 = arith.addf %13, %44 : vector<8x8xf32>
    %46 = vector.extract_strided_slice %12 {offsets = [0, 1], sizes = [8, 1], strides = [1, 1]} : vector<8x4xf32> to vector<8x1xf32>
    %47 = vector.extract_strided_slice %10 {offsets = [1, 0], sizes = [1, 16], strides = [1, 1]} : vector<4x16xf32> to vector<1x16xf32>
    %48 = vector.broadcast %46 : vector<8x1xf32> to vector<8x16xf32>
    %49 = vector.broadcast %47 : vector<1x16xf32> to vector<8x16xf32>
    %50 = arith.addf %48, %49 : vector<8x16xf32>
    %cst_18 = arith.constant 0.000000e+00 : f32
    %51 = vector.broadcast %cst_18 : f32 to vector<8x16xf32>
    %52 = arith.cmpf ogt, %50, %51 : vector<8x16xf32>
    %cst_19 = arith.constant 2.000000e-01 : f32
    %53 = vector.broadcast %cst_19 : f32 to vector<8x16xf32>
    %54 = arith.mulf %53, %50 : vector<8x16xf32>
    %55 = arith.select %52, %50, %54 : vector<8x16xi1>, vector<8x16xf32>
    %cst_20 = arith.constant 0.000000e+00 : f32
    %56 = vector.broadcast %cst_20 : f32 to vector<8x16xf32>
    %57 = arith.cmpf ogt, %8, %56 : vector<8x16xf32>
    %cst_21 = arith.constant -1.000000e+30 : f32
    %58 = vector.broadcast %cst_21 : f32 to vector<8x16xf32>
    %59 = arith.select %57, %55, %58 : vector<8x16xi1>, vector<8x16xf32>
    %cst_22 = arith.constant dense<0xFF800000> : vector<8xf32>
    %60 = vector.multi_reduction <maximumf>, %59, %cst_22 [1] : vector<8x16xf32> to vector<8xf32>
    %61 = vector.shape_cast %60 : vector<8xf32> to vector<8x1xf32>
    %62 = vector.broadcast %61 : vector<8x1xf32> to vector<8x16xf32>
    %63 = arith.subf %59, %62 : vector<8x16xf32>
    %64 = math.exp %63 : vector<8x16xf32>
    %65 = arith.mulf %64, %8 : vector<8x16xf32>
    %cst_23 = arith.constant dense<0.000000e+00> : vector<8xf32>
    %66 = vector.multi_reduction <add>, %65, %cst_23 [1] : vector<8x16xf32> to vector<8xf32>
    %67 = vector.shape_cast %66 : vector<8xf32> to vector<8x1xf32>
    %cst_24 = arith.constant 9.99999971E-10 : f32
    %68 = vector.broadcast %cst_24 : f32 to vector<8x1xf32>
    %69 = arith.maximumf %67, %68 : vector<8x1xf32>
    %70 = tpu.reciprocal %69 {approx = true} : vector<8x1xf32> -> vector<8x1xf32>
    %71 = vector.broadcast %70 : vector<8x1xf32> to vector<8x16xf32>
    %72 = arith.mulf %65, %71 : vector<8x16xf32>
    %73 = vector.extract_strided_slice %3 {offsets = [0, 8], sizes = [16, 8], strides = [1, 1]} : vector<16x32xf32> to vector<16x8xf32>
    %74 = arith.truncf %72 : vector<8x16xf32> to vector<8x16xbf16>
    %75 = arith.truncf %73 : vector<16x8xf32> to vector<16x8xbf16>
    %cst_25 = arith.constant dense<0.000000e+00> : vector<8x8xf32>
    %76 = tpu.matmul %74, %75, %cst_25 {dimension_numbers = #tpu.dot_dimension_numbers<[1], [0], [0], [1], [0, 0, 1, 1], [], []>} : vector<8x16xbf16>, vector<16x8xbf16>, vector<8x8xf32> -> vector<8x8xf32>
    %77 = arith.addf %45, %76 : vector<8x8xf32>
    %78 = vector.extract_strided_slice %12 {offsets = [0, 2], sizes = [8, 1], strides = [1, 1]} : vector<8x4xf32> to vector<8x1xf32>
    %79 = vector.extract_strided_slice %10 {offsets = [2, 0], sizes = [1, 16], strides = [1, 1]} : vector<4x16xf32> to vector<1x16xf32>
    %80 = vector.broadcast %78 : vector<8x1xf32> to vector<8x16xf32>
    %81 = vector.broadcast %79 : vector<1x16xf32> to vector<8x16xf32>
    %82 = arith.addf %80, %81 : vector<8x16xf32>
    %cst_26 = arith.constant 0.000000e+00 : f32
    %83 = vector.broadcast %cst_26 : f32 to vector<8x16xf32>
    %84 = arith.cmpf ogt, %82, %83 : vector<8x16xf32>
    %cst_27 = arith.constant 2.000000e-01 : f32
    %85 = vector.broadcast %cst_27 : f32 to vector<8x16xf32>
    %86 = arith.mulf %85, %82 : vector<8x16xf32>
    %87 = arith.select %84, %82, %86 : vector<8x16xi1>, vector<8x16xf32>
    %cst_28 = arith.constant 0.000000e+00 : f32
    %88 = vector.broadcast %cst_28 : f32 to vector<8x16xf32>
    %89 = arith.cmpf ogt, %8, %88 : vector<8x16xf32>
    %cst_29 = arith.constant -1.000000e+30 : f32
    %90 = vector.broadcast %cst_29 : f32 to vector<8x16xf32>
    %91 = arith.select %89, %87, %90 : vector<8x16xi1>, vector<8x16xf32>
    %cst_30 = arith.constant dense<0xFF800000> : vector<8xf32>
    %92 = vector.multi_reduction <maximumf>, %91, %cst_30 [1] : vector<8x16xf32> to vector<8xf32>
    %93 = vector.shape_cast %92 : vector<8xf32> to vector<8x1xf32>
    %94 = vector.broadcast %93 : vector<8x1xf32> to vector<8x16xf32>
    %95 = arith.subf %91, %94 : vector<8x16xf32>
    %96 = math.exp %95 : vector<8x16xf32>
    %97 = arith.mulf %96, %8 : vector<8x16xf32>
    %cst_31 = arith.constant dense<0.000000e+00> : vector<8xf32>
    %98 = vector.multi_reduction <add>, %97, %cst_31 [1] : vector<8x16xf32> to vector<8xf32>
    %99 = vector.shape_cast %98 : vector<8xf32> to vector<8x1xf32>
    %cst_32 = arith.constant 9.99999971E-10 : f32
    %100 = vector.broadcast %cst_32 : f32 to vector<8x1xf32>
    %101 = arith.maximumf %99, %100 : vector<8x1xf32>
    %102 = tpu.reciprocal %101 {approx = true} : vector<8x1xf32> -> vector<8x1xf32>
    %103 = vector.broadcast %102 : vector<8x1xf32> to vector<8x16xf32>
    %104 = arith.mulf %97, %103 : vector<8x16xf32>
    %105 = vector.extract_strided_slice %3 {offsets = [0, 16], sizes = [16, 8], strides = [1, 1]} : vector<16x32xf32> to vector<16x8xf32>
    %106 = arith.truncf %104 : vector<8x16xf32> to vector<8x16xbf16>
    %107 = arith.truncf %105 : vector<16x8xf32> to vector<16x8xbf16>
    %cst_33 = arith.constant dense<0.000000e+00> : vector<8x8xf32>
    %108 = tpu.matmul %106, %107, %cst_33 {dimension_numbers = #tpu.dot_dimension_numbers<[1], [0], [0], [1], [0, 0, 1, 1], [], []>} : vector<8x16xbf16>, vector<16x8xbf16>, vector<8x8xf32> -> vector<8x8xf32>
    %109 = arith.addf %77, %108 : vector<8x8xf32>
    %110 = vector.extract_strided_slice %12 {offsets = [0, 3], sizes = [8, 1], strides = [1, 1]} : vector<8x4xf32> to vector<8x1xf32>
    %111 = vector.extract_strided_slice %10 {offsets = [3, 0], sizes = [1, 16], strides = [1, 1]} : vector<4x16xf32> to vector<1x16xf32>
    %112 = vector.broadcast %110 : vector<8x1xf32> to vector<8x16xf32>
    %113 = vector.broadcast %111 : vector<1x16xf32> to vector<8x16xf32>
    %114 = arith.addf %112, %113 : vector<8x16xf32>
    %cst_34 = arith.constant 0.000000e+00 : f32
    %115 = vector.broadcast %cst_34 : f32 to vector<8x16xf32>
    %116 = arith.cmpf ogt, %114, %115 : vector<8x16xf32>
    %cst_35 = arith.constant 2.000000e-01 : f32
    %117 = vector.broadcast %cst_35 : f32 to vector<8x16xf32>
    %118 = arith.mulf %117, %114 : vector<8x16xf32>
    %119 = arith.select %116, %114, %118 : vector<8x16xi1>, vector<8x16xf32>
    %cst_36 = arith.constant 0.000000e+00 : f32
    %120 = vector.broadcast %cst_36 : f32 to vector<8x16xf32>
    %121 = arith.cmpf ogt, %8, %120 : vector<8x16xf32>
    %cst_37 = arith.constant -1.000000e+30 : f32
    %122 = vector.broadcast %cst_37 : f32 to vector<8x16xf32>
    %123 = arith.select %121, %119, %122 : vector<8x16xi1>, vector<8x16xf32>
    %cst_38 = arith.constant dense<0xFF800000> : vector<8xf32>
    %124 = vector.multi_reduction <maximumf>, %123, %cst_38 [1] : vector<8x16xf32> to vector<8xf32>
    %125 = vector.shape_cast %124 : vector<8xf32> to vector<8x1xf32>
    %126 = vector.broadcast %125 : vector<8x1xf32> to vector<8x16xf32>
    %127 = arith.subf %123, %126 : vector<8x16xf32>
    %128 = math.exp %127 : vector<8x16xf32>
    %129 = arith.mulf %128, %8 : vector<8x16xf32>
    %cst_39 = arith.constant dense<0.000000e+00> : vector<8xf32>
    %130 = vector.multi_reduction <add>, %129, %cst_39 [1] : vector<8x16xf32> to vector<8xf32>
    %131 = vector.shape_cast %130 : vector<8xf32> to vector<8x1xf32>
    %cst_40 = arith.constant 9.99999971E-10 : f32
    %132 = vector.broadcast %cst_40 : f32 to vector<8x1xf32>
    %133 = arith.maximumf %131, %132 : vector<8x1xf32>
    %134 = tpu.reciprocal %133 {approx = true} : vector<8x1xf32> -> vector<8x1xf32>
    %135 = vector.broadcast %134 : vector<8x1xf32> to vector<8x16xf32>
    %136 = arith.mulf %129, %135 : vector<8x16xf32>
    %137 = vector.extract_strided_slice %3 {offsets = [0, 24], sizes = [16, 8], strides = [1, 1]} : vector<16x32xf32> to vector<16x8xf32>
    %138 = arith.truncf %136 : vector<8x16xf32> to vector<8x16xbf16>
    %139 = arith.truncf %137 : vector<16x8xf32> to vector<16x8xbf16>
    %cst_41 = arith.constant dense<0.000000e+00> : vector<8x8xf32>
    %140 = tpu.matmul %138, %139, %cst_41 {dimension_numbers = #tpu.dot_dimension_numbers<[1], [0], [0], [1], [0, 0, 1, 1], [], []>} : vector<8x16xbf16>, vector<16x8xbf16>, vector<8x8xf32> -> vector<8x8xf32>
    %141 = arith.addf %109, %140 : vector<8x8xf32>
    %cst_42 = arith.constant 2.500000e-01 : f32
    %142 = vector.broadcast %cst_42 : f32 to vector<8x8xf32>
    %143 = arith.mulf %141, %142 : vector<8x8xf32>
    %144 = arith.addf %143, %7 : vector<8x8xf32>
    %c0_43 = arith.constant 0 : index
    %c0_44 = arith.constant 0 : index
    %145 = vector.load %arg5[%c0_43, %c0_44] : memref<1x8xf32, #tpu.memory_space<vmem>>, vector<1x8xf32>
    %146 = vector.broadcast %145 : vector<1x8xf32> to vector<8x8xf32>
    %147 = arith.addf %144, %146 : vector<8x8xf32>
    %cst_45 = arith.constant dense<0xFF800000> : vector<8xf32>
    %148 = vector.multi_reduction <maximumf>, %147, %cst_45 [1] : vector<8x8xf32> to vector<8xf32>
    %149 = vector.shape_cast %148 : vector<8xf32> to vector<8x1xf32>
    %150 = vector.broadcast %149 : vector<8x1xf32> to vector<8x8xf32>
    %151 = arith.subf %147, %150 : vector<8x8xf32>
    %152 = math.exp %151 : vector<8x8xf32>
    %cst_46 = arith.constant dense<0.000000e+00> : vector<8xf32>
    %153 = vector.multi_reduction <add>, %152, %cst_46 [1] : vector<8x8xf32> to vector<8xf32>
    %154 = vector.shape_cast %153 : vector<8xf32> to vector<8x1xf32>
    %155 = math.log %154 : vector<8x1xf32>
    %156 = vector.broadcast %155 : vector<8x1xf32> to vector<8x8xf32>
    %157 = arith.subf %151, %156 : vector<8x8xf32>
    %c0_47 = arith.constant 0 : index
    %c0_48 = arith.constant 0 : index
    %158 = vector.load %arg6[%c0_47, %c0_48] : memref<8x8xf32, #tpu.memory_space<vmem>>, vector<8x8xf32>
    tpu.vector_store %arg6[%c0_47, %c0_48], %157 {strides = array<i32>} : memref<8x8xf32, #tpu.memory_space<vmem>>, vector<8x8xf32>,
    return
  }
  func.func @transform_0(%arg0: i32) -> (i32, i32) {
    %c0_i32 = arith.constant 0 : i32
    %c0_i32_0 = arith.constant 0 : i32
    return %arg0, %c0_i32 : i32, i32
  }
  func.func @transform_1(%arg0: i32) -> (i32, i32) {
    %c0_i32 = arith.constant 0 : i32
    %c0_i32_0 = arith.constant 0 : i32
    %c0_i32_1 = arith.constant 0 : i32
    return %c0_i32, %c0_i32_0 : i32, i32
  }
  func.func @transform_2(%arg0: i32) -> (i32, i32) {
    %c0_i32 = arith.constant 0 : i32
    %c0_i32_0 = arith.constant 0 : i32
    %c0_i32_1 = arith.constant 0 : i32
    return %c0_i32, %c0_i32_0 : i32, i32
  }
  func.func @transform_3(%arg0: i32) -> (i32, i32) {
    %c0_i32 = arith.constant 0 : i32
    %c0_i32_0 = arith.constant 0 : i32
    %c0_i32_1 = arith.constant 0 : i32
    return %c0_i32, %c0_i32_0 : i32, i32
  }
  func.func @transform_4(%arg0: i32) -> (i32, i32) {
    %c0_i32 = arith.constant 0 : i32
    %c0_i32_0 = arith.constant 0 : i32
    %c0_i32_1 = arith.constant 0 : i32
    return %c0_i32, %c0_i32_0 : i32, i32
  }
  func.func @transform_5(%arg0: i32) -> (i32, i32) {
    %c0_i32 = arith.constant 0 : i32
    %c0_i32_0 = arith.constant 0 : i32
    return %arg0, %c0_i32 : i32, i32
  }
}

</mosaic_0001>

<bundles_post_ra>
// kernel: gat_forward.8
= control target key start
LH: loop header
LB: loop body
LE: loop exit
PB: predicated region body
PF: predicated region fallthrough
CT: control target
= control target key end

     0   :  { %v155_v0 = vmov 0.0|0.0   ;;  %vm156_vm0 = vmmov 0   ;;  %v157_v6 = vmov 0.0   ;;  %vm18_vm1 = vcmask 261120   ;;  %s206_s1 = inlined_call_operand.vmem [shape: f32[32,128], index: 1, kind: input, shape index: {}]   ;;  %s207_s0 = inlined_call_operand.vmem [shape: f32[24,32], index: 0, kind: input, shape index: {}]   ;;  %s208_s2 = inlined_call_operand.vmem [shape: f32[24,128], index: 2, kind: output, shape index: {}]  }
   0x1   :  { %148 = vmatprep.subr.bf16.mxu1 %v155_v0  ;;  %v14_v1 = vld [vmem:[%s206_s1] sm:$0xff]  ;;  %v15_v2 = vld [vmem:[%s206_s1 + $0x8] sm:$0xff]  ;;  %142 = vmatprep.subr.bf16.mxu0 %v155_v0  ;;  %v16_v3 = vld [vmem:[%s206_s1 + $0x10] sm:$0xff] }
   0x2   :  { %v143_v4 = vpack.c.bf16 %v15_v2, %v14_v1  ;;  %v17_v5 = vld [vmem:[%s206_s1 + $0x18] sm:$0xff]  ;;  %136 = vmatprep.mubr.msk.f32.mxu1 %vm156_vm0, %v157_v6  ;;  %133 = vmatprep.mubr.msk.f32.mxu0 %vm156_vm0, %v157_v6  ;;  %v12_v8 = vld [vmem:[%s207_s0 + $0x8] sm:$0xff]  ;;  %v11_v9 = vld [vmem:[%s207_s0] sm:$0xff] }
   0x3   :  { %v146_v7 = vpack.c.bf16 %v17_v5, %v16_v3  ;;  %v13_v10 = vld [vmem:[%s207_s0 + $0x10] sm:$0xff] }
   0x4   :  { %150 = vmatpush3.bf16.msra.mxu1 %v143_v4  ;;  %144 = vmatpush3.bf16.msra.mxu0 %v143_v4 }
   0x5   :  { %149 = vmatprep.subr.bf16.mxu1 %v155_v0  ;;  %145 = vmatprep.subr.bf16.mxu0 %v155_v0 }
   0x8   :  { %151 = vmatpush3.bf16.msra.mxu1 %v146_v7  ;;  %147 = vmatpush3.bf16.msra.mxu0 %v146_v7 }
   0xb   :  { %137 = vmatmul.mubr.msk.f32.vlgmr.msra.gmra.mrb[0].mxu1 %vm18_vm1, %v12_v8  ;;  %134 = vmatmul.mubr.msk.f32.vlgmr.msra.gmra.mrb[0].mxu0 %vm18_vm1, %v11_v9 }
   0xc   :  { %139 = vmatprep.mubr.msk.f32.mxu1 %vm156_vm0, %v157_v6 }
   0xf   :  { %140 = vmatmul.mubr.msk.f32.gmra.mrb[2].mxu1 %vm18_vm1, %v13_v10 }
  0xde   :  { %v99_v11 = vpop.f32.mrb[0].mxu1  ;;  %v94_v12 = vpop.f32.mrb[0].mxu0 }
  0xdf   :  { %109 = vst [vmem:[%s208_s2 + $0x8] sm:$0xff] %v99_v11  ;;  %v138_v13 = vpop.f32.mrb[1].mxu1  ;;  %108 = vst [vmem:[%s208_s2] sm:$0xff] %v94_v12  ;;  %v135_v14 = vpop.f32.mrb[1].mxu0 }
  0xe2   :  { %v104_v15 = vpop.f32.mrb[2].mxu1 }
  0xe3   :  { %110 = vst [vmem:[%s208_s2 + $0x10] sm:$0xff] %v104_v15  ;;  %v141_v16 = vpop.f32.mrb[3].mxu1 }

// kernel: gat_forward.6
= control target key start
LH: loop header
LB: loop body
LE: loop exit
PB: predicated region body
PF: predicated region fallthrough
CT: control target
= control target key end

     0   :  { %vm17_vm0 = vcmask 130048   ;;  %s194_s1 = inlined_call_operand.vmem [shape: f32[16,128], index: 1, kind: input, shape index: {}]   ;;  %s195_s0 = inlined_call_operand.vmem [shape: f32[32,16], index: 0, kind: input, shape index: {}]   ;;  %s196_s2 = inlined_call_operand.vmem [shape: f32[32,128], index: 2, kind: output, shape index: {}]  }
   0x1   :  { %v15_v0 = vld [vmem:[%s194_s1] sm:$0xff]  ;;  %v16_v1 = vld [vmem:[%s194_s1 + $0x8] sm:$0xff]  ;;  %v13_v4 = vld [vmem:[%s195_s0 + $0x10] sm:$0xff] }
   0x2   :  { %v11_v2 = vld [vmem:[%s195_s0] sm:$0xff]  ;;  %v143_v3 = vpack.c.bf16 %v16_v1, %v15_v0  ;;  %140 = vmatprep.mubr.msk.f32.mxu1 %vm17_vm0, %v13_v4  ;;  %v12_v5 = vld [vmem:[%s195_s0 + $0x8] sm:$0xff]  ;;  %v14_v6 = vld [vmem:[%s195_s0 + $0x18] sm:$0xff] }
   0x3   :  { %137 = vmatprep.mubr.msk.f32.mxu0 %vm17_vm0, %v11_v2 }
   0x4   :  { %144 = vmatprep.subr.bf16.mxu0 %v143_v3  ;;  %147 = vmatprep.subr.bf16.mxu1 %v143_v3 }
   0x5   :  { %146 = vmatpush3.bf16.msra.mxu0 %v143_v3  ;;  %148 = vmatpush3.bf16.msra.mxu1 %v143_v3 }
   0x8   :  { %138 = vmatmul.mubr.msk.f32.vlgmr.msra.gmra.mrb[0].mxu0 %vm17_vm0, %v12_v5  ;;  %141 = vmatmul.mubr.msk.f32.vlgmr.msra.gmra.mrb[0].mxu1 %vm17_vm0, %v14_v6 }
  0xdb   :  { %v139_v7 = vpop.f32.mrb[0].mxu0  ;;  %v142_v8 = vpop.f32.mrb[0].mxu1 }
  0xdc   :  { %116 = vst [vmem:[%s196_s2 + $0x8] sm:$0xff] %v139_v7  ;;  %118 = vst [vmem:[%s196_s2 + $0x18] sm:$0xff] %v142_v8  ;;  %v96_v9 = vpop.f32.mrb[1].mxu0  ;;  %v106_v10 = vpop.f32.mrb[1].mxu1 }
  0xdd   :  { %115 = vst [vmem:[%s196_s2] sm:$0xff] %v96_v9  ;;  %117 = vst [vmem:[%s196_s2 + $0x10] sm:$0xff] %v106_v10 }

// kernel: gat_forward.7
= control target key start
LH: loop header
LB: loop body
LE: loop exit
PB: predicated region body
PF: predicated region fallthrough
CT: control target
= control target key end

     0   :  { %v1041_v0 = vmov 0.0|0.0   ;;  %vm1042_vm0 = vmmov 0   ;;  %v1043_v4 = vmov 0.0   ;;  %vm34_vm1 = vcmask 261120   ;;  %s1049_s14 = smov 112   ;;  %s1050_s15 = smov 104   ;;  %s1386_s3 = inlined_call_operand.vmem [shape: f32[32,4], index: 3, kind: input, shape index: {}]   ;;  %s1387_s1 = inlined_call_operand.vmem [shape: f32[32,128], index: 1, kind: input, shape index: {}]   ;;  %s1388_s2 = inlined_call_operand.vmem [shape: f32[4,32], index: 2, kind: input, shape index: {}]   ;;  %s1389_s0 = inlined_call_operand.vmem [shape: f32[24,32], index: 0, kind: input, shape index: {}]   ;;  %s1390_s4 = inlined_call_operand.vmem [shape: f32[1,32], index: 4, kind: input, shape index: {}]   ;;  %s1391_s5 = inlined_call_operand.vmem [shape: f32[24,32], index: 5, kind: output, shape index: {}]  }
   0x1   :  { %956 = vmatprep.subr.bf16.mxu1 %v1041_v0  ;;  %v120_v1 = vld [vmem:[%s1386_s3] sm:$0xff]  ;;  %v121_v2 = vld [vmem:[%s1386_s3 + $0x8] sm:$0xff]  ;;  %v122_v3 = vld [vmem:[%s1386_s3 + $0x10] sm:$0xff]  ;;  %907 = vmatprep.mubr.msk.f32.mxu1 %vm1042_vm0, %v1043_v4  ;;  %v1044_v11 = vmov 1   ;;  %v1045_v12 = vmov 0   ;;  %v1046_v21 = vmov 2   ;;  %v228_v28 = vlaneseq }
   0x2   :  { %v957_v5 = vpack.c.bf16 %v121_v2, %v120_v1  ;;  %v123_v6 = vld [vmem:[%s1386_s3 + $0x18] sm:$0xff]  ;;  %v1101_v7 = vld [vmem:[%s1387_s1] sm:$0xff]  ;;  %v1106_v8 = vld [vmem:[%s1387_s1 + $0x8] sm:$0xff]  ;;  %948 = vmatprep.subr.bf16.mxu0 %v1041_v0  ;;  %896 = vmatprep.mubr.msk.f32.mxu0 %vm1042_vm0, %v1043_v4  ;;  %v1047_v26 = vmov 3   ;;  %s1051_s16 = smov 96   ;;  %s1052_s17 = smov 8  }
   0x3   :  { %v1111_v9 = vpack.c.bf16 %v1106_v8, %v1101_v7  ;;  %vm1115_vm2 = vmpackc.low %vm34_vm1, %vm34_vm1  ;;  %977 = vset.pattern.permute.xlu1 %v1044_v11  ;;  %976 = vset.pattern.permute.xlu0 %v1045_v12  ;;  %v960_v13 = vpack.c.bf16 %v123_v6, %v122_v3  ;;  %v25_v14 = vld [vmem:[%s1387_s1 + $0x18] sm:$0xff]  ;;  %v1128_v15 = vld [vmem:[%s1387_s1 + $0x10] sm:$0xff]  ;;  %v229_v29 = vshrl.u32 %v228_v28, 7  ;;  %s1053_s18 = smov 24   ;;  %s1054_s19 = smov 16  }
   0x4   :  { %958 = vmatpush3.bf16.msra.mxu1 %v957_v5  ;;  %v1131_v16 = vpack.c.bf16 %v25_v14, %v1128_v15  ;;  %v33_v17 = vld [vmem:[%s1388_s2] sm:$0xf]  ;;  %v1178_v52 = vld [vmem:[%s1389_s0 + $0x8] sm:$0xff]  ;;  %v1203_v10 = vld [vmem:[%s1389_s0 + $0x10] sm:$0xff] }
   0x5   :  { %959 = vmatprep.subr.bf16.mxu1 %v1041_v0  ;;  %951 = vmatpush3.bf16.xpose.msk.msra.mxu0 %vm1115_vm2, %v1111_v9  ;;  %v361_v30 = vsub.s32 1, %v229_v29  ;;  %v230_v31 = vsub.s32 0, %v229_v29  ;;  %v495_v34 = vsub.s32 2, %v229_v29  ;;  %v1161_v35 = vld [vmem:[%s1389_s0] sm:$0xff]  ;;  %vm245_vm8 = vcmp.gt.f32.partialorder %v1178_v52, 0.0  ;;  %s1048_s0 = smov 120  }
   0x6   :  { %952 = vmatprep.subr.bf16.mxu0 %v1041_v0  ;;  %vm244_vm3 = vcmp.gt.f32.partialorder %v1161_v35, 0.0  ;;  %v627_v60 = vsub.s32 3, %v229_v29  ;;  %vm246_vm12 = vcmp.gt.f32.partialorder %v1203_v10, 0.0 }
   0x8   :  { %961 = vmatpush3.bf16.msra.mxu1 %v960_v13 }
   0x9   :  { %916 = vmatprep.subr.bf16.mxu1 %v1111_v9 }
   0xb   :  { %908 = vmatmul.mubr.msk.f32.vlgmr.msra.gmra.mrb[0].mxu1 %vm34_vm1, %v1101_v7 }
   0xc   :  { %910 = vmatprep.mubr.msk.f32.mxu1 %vm1042_vm0, %v1043_v4  ;;  %917 = vmatpush3.bf16.msra.mxu1 %v1111_v9 }
   0xd   :  { %955 = vmatpush3.bf16.xpose.msk.msra.mxu0 %vm1115_vm2, %v1131_v16  ;;  %918 = vmatprep.subr.bf16.mxu1 %v1131_v16 }
   0xf   :  { %911 = vmatmul.mubr.msk.f32.gmra.mrb[2].mxu1 %vm34_vm1, %v1106_v8 }
  0x10   :  { %913 = vmatprep.mubr.msk.f32.mxu1 %vm1042_vm0, %v1043_v4  ;;  %919 = vmatpush3.bf16.msra.mxu1 %v1131_v16 }
  0x13   :  { %914 = vmatmul.mubr.msk.f32.gmra.mrb[4].mxu1 %vm34_vm1, %v1128_v15 }
  0x14   :  { %897 = vmatmul.mubr.msk.f32.vlgmr.msra.gmra.mrb[0].mxu0 %vm34_vm1, %v33_v17 }
  0xde   :  { %v199_v18 = vpop.f32.mrb[0].mxu1 }
  0xdf   :  { %348 = vperm.xlu1 %977, %v199_v18   ;;  %215 = vperm.xlu0 %976, %v199_v18   ;;  %v909_v19 = vpop.f32.mrb[1].mxu1 }
  0xe2   :  { %v204_v20 = vpop.f32.mrb[2].mxu1 }
  0xe3   :  { %978 = vset.pattern.permute.xlu1 %v1046_v21  ;;  %220 = vperm.xlu0 %976, %v204_v20   ;;  %v912_v22 = vpop.f32.mrb[3].mxu1 }
  0xe4   :  { %482 = vperm.xlu1 %978, %v199_v18  }
  0xe6   :  { %v209_v23 = vpop.f32.mrb[4].mxu1 }
  0xe7   :  { %980 = vset.pattern.permute.xlu0 %v1044_v11  ;;  %v915_v24 = vpop.f32.mrb[5].mxu1  ;;  %v1152_v25 = vpop.f32.mrb[0].mxu0 }
  0xe8   :  { %979 = vset.pattern.permute.xlu1 %v1047_v26  ;;  %352 = vperm.xlu0 %980, %v204_v20   ;;  %v898_v27 = vpop.f32.mrb[1].mxu0  ;;  %v1155_v32 = vrot.slane %v1152_v25, %v361_v30  ;;  %v231_v33 = vrot.slane %v1152_v25, %v230_v31  ;;  %v1165_v40 = vrot.slane %v1152_v25, %v495_v34 }
  0xe9   :  { %614 = vperm.xlu1 %979, %v199_v18   ;;  %v628_v4 = vrot.slane %v1152_v25, %v627_v60 }
  0xec   :  { %981 = vset.pattern.permute.xlu0 %v1046_v21 }
  0xed   :  { %983 = vset.pattern.permute.xlu1 %v1045_v12  ;;  %486 = vperm.xlu0 %981, %v204_v20  }
  0xee   :  { %225 = vperm.xlu1 %983, %v209_v23  }
  0xf1   :  { %982 = vset.pattern.permute.xlu0 %v1047_v26 }
  0xf2   :  { %618 = vperm.xlu0 %982, %v204_v20   ;;  %984 = vset.pattern.permute.xlu1 %v1044_v11 }
  0xf3   :  { %356 = vperm.xlu1 %984, %v209_v23  }
  0xf7   :  { %985 = vset.pattern.permute.xlu1 %v1046_v21 }
  0xf8   :  { %490 = vperm.xlu1 %985, %v209_v23  }
  0xfc   :  { %986 = vset.pattern.permute.xlu1 %v1047_v26 }
  0xfd   :  { %622 = vperm.xlu1 %986, %v209_v23  }
 0x15e   :  { %v349_v36 = vpop.permute.xlu1 %348  ;;  %v216_v37 = vpop.permute.xlu0 %215 }
 0x15f   :  { %v363_v38 = vadd.f32 %v1155_v32, %v349_v36  ;;  %v232_v39 = vadd.f32 %v231_v33, %v216_v37 }
 0x161   :  { %v369_v41 = vmul.f32 0.2, %v363_v38  ;;  %v238_v42 = vmul.f32 0.2, %v232_v39  ;;  %vm235_vm4 = vcmp.gt.f32.partialorder %v232_v39, 0.0  ;;  %vm366_vm5 = vcmp.gt.f32.partialorder %v363_v38, 0.0 }
 0x162   :  { %v221_v43 = vpop.permute.xlu0 %220 }
 0x163   :  { %v233_v44 = vadd.f32 %v231_v33, %v221_v43  ;;  %v483_v45 = vpop.permute.xlu1 %482  ;;  %v241_v46 = vsel %vm235_vm4, %v232_v39, %v238_v42  ;;  %v372_v47 = vsel %vm366_vm5, %v363_v38, %v369_v41  ;;  %vm785_vm4 = vcmask 130048  }
 0x164   :  { %v497_v48 = vadd.f32 %v1165_v40, %v483_v45  ;;  %v1171_v49 = vsel %vm244_vm3, %v241_v46, -1e+30  ;;  %v1182_v54 = vsel %vm244_vm3, %v372_v47, -1e+30  ;;  %vm789_vm5 = vcmask 195584  }
 0x165   :  { %v239_v50 = vmul.f32 0.2, %v233_v44  ;;  %v250_v51 = vsel %vm34_vm1, %v1171_v49, -inf  ;;  %vm236_vm6 = vcmp.gt.f32.partialorder %v233_v44, 0.0  ;;  %v378_v61 = vsel %vm34_vm1, %v1182_v54, -inf }
 0x166   :  { %v503_v53 = vmul.f32 0.2, %v497_v48  ;;  %251 = vmax.xlane.f32.xlu1 %v250_v51  ;;  %vm500_vm7 = vcmp.gt.f32.partialorder %v497_v48, 0.0 }
 0x167   :  { %v353_v55 = vpop.permute.xlu0 %352  ;;  %v242_v59 = vsel %vm236_vm6, %v233_v44, %v239_v50 }
 0x168   :  { %v364_v56 = vadd.f32 %v1155_v32, %v353_v55  ;;  %v615_v57 = vpop.permute.xlu1 %614  ;;  %v506_v58 = vsel %vm500_vm7, %v497_v48, %v503_v53  ;;  %v1196_v1 = vsel %vm245_vm8, %v242_v59, -1e+30 }
 0x169   :  { %v1190_v62 = vsel %vm244_vm3, %v506_v58, -1e+30  ;;  %v253_v12 = vsel %vm34_vm1, %v1196_v1, -inf  ;;  %v629_v13 = vadd.f32 %v628_v4, %v615_v57 }
 0x16a   :  { %v370_v63 = vmul.f32 0.2, %v364_v56  ;;  %379 = vmax.xlane.f32.xlu1 %v378_v61  ;;  %v512_v0 = vsel %vm34_vm1, %v1190_v62, -inf  ;;  %vm367_vm9 = vcmp.gt.f32.partialorder %v364_v56, 0.0 }
 0x16b   :  { %513 = vmax.xlane.f32.xlu0 %v512_v0  ;;  %v635_v26 = vmul.f32 0.2, %v629_v13  ;;  %vm632_vm14 = vcmp.gt.f32.partialorder %v629_v13, 0.0 }
 0x16c   :  { %v487_v2 = vpop.permute.xlu0 %486  ;;  %v373_v3 = vsel %vm367_vm9, %v364_v56, %v370_v63 }
 0x16d   :  { %v498_v5 = vadd.f32 %v1165_v40, %v487_v2  ;;  %v226_v6 = vpop.permute.xlu1 %225  ;;  %v1209_v17 = vsel %vm245_vm8, %v373_v3, -1e+30  ;;  %v638_v38 = vsel %vm632_vm14, %v629_v13, %v635_v26 }
 0x16e   :  { %v234_v11 = vadd.f32 %v231_v33, %v226_v6  ;;  %v381_v23 = vsel %vm34_vm1, %v1209_v17, -inf  ;;  %v1242_v45 = vsel %vm244_vm3, %v638_v38, -1e+30  ;;  %vm781_vm3 = vcmask 64512  }
 0x16f   :  { %v504_v14 = vmul.f32 0.2, %v498_v5  ;;  %254 = vmax.xlane.f32.xlu0 %v253_v12  ;;  %vm501_vm10 = vcmp.gt.f32.partialorder %v498_v5, 0.0  ;;  %v644_v48 = vsel %vm34_vm1, %v1242_v45, -inf }
 0x170   :  { %v240_v18 = vmul.f32 0.2, %v234_v11  ;;  %vm237_vm11 = vcmp.gt.f32.partialorder %v234_v11, 0.0 }
 0x171   :  { %v619_v19 = vpop.permute.xlu0 %618  ;;  %v507_v20 = vsel %vm501_vm10, %v498_v5, %v504_v14 }
 0x172   :  { %v630_v21 = vadd.f32 %v628_v4, %v619_v19  ;;  %v357_v22 = vpop.permute.xlu1 %356  ;;  %v1216_v24 = vsel %vm245_vm8, %v507_v20, -1e+30  ;;  %v243_v25 = vsel %vm237_vm11, %v234_v11, %v240_v18 }
 0x173   :  { %v365_v27 = vadd.f32 %v1155_v32, %v357_v22  ;;  %382 = vmax.xlane.f32.xlu0 %v381_v23  ;;  %v515_v28 = vsel %vm34_vm1, %v1216_v24, -inf  ;;  %v1223_v29 = vsel %vm246_vm12, %v243_v25, -1e+30 }
 0x174   :  { %v636_v30 = vmul.f32 0.2, %v630_v21  ;;  %516 = vmax.xlane.f32.xlu1 %v515_v28  ;;  %vm633_vm13 = vcmp.gt.f32.partialorder %v630_v21, 0.0  ;;  %v256_v33 = vsel %vm34_vm1, %v1223_v29, -inf }
 0x175   :  { %v371_v31 = vmul.f32 0.2, %v365_v27  ;;  %vm368_vm15 = vcmp.gt.f32.partialorder %v365_v27, 0.0 }
 0x176   :  { %v639_v34 = vsel %vm633_vm13, %v630_v21, %v636_v30 }
 0x177   :  { %v491_v36 = vpop.permute.xlu1 %490  ;;  %257 = vmax.xlane.f32.xlu0 %v256_v33  ;;  %v374_v32 = vsel %vm368_vm15, %v365_v27, %v371_v31  ;;  %v1229_v37 = vsel %vm245_vm8, %v639_v34, -1e+30 }
 0x178   :  { %v499_v39 = vadd.f32 %v1165_v40, %v491_v36  ;;  %v1234_v41 = vsel %vm246_vm12, %v374_v32, -1e+30  ;;  %v647_v44 = vsel %vm34_vm1, %v1229_v37, -inf }
 0x179   :  { %v384_v42 = vsel %vm34_vm1, %v1234_v41, -inf }
 0x17a   :  { %v505_v43 = vmul.f32 0.2, %v499_v39  ;;  %385 = vmax.xlane.f32.xlu1 %v384_v42  ;;  %vm502_vm0 = vcmp.gt.f32.partialorder %v499_v39, 0.0 }
 0x17b   :  { %648 = vmax.xlane.f32.xlu0 %v647_v44 }
 0x17c   :  { %v623_v46 = vpop.permute.xlu1 %622  ;;  %v508_v40 = vsel %vm502_vm0, %v499_v39, %v505_v43 }
 0x17d   :  { %v631_v47 = vadd.f32 %v628_v4, %v623_v46  ;;  %v1248_v50 = vsel %vm246_vm12, %v508_v40, -1e+30 }
 0x17e   :  { %645 = vmax.xlane.f32.xlu1 %v644_v48  ;;  %v518_v51 = vsel %vm34_vm1, %v1248_v50, -inf }
 0x17f   :  { %v637_v53 = vmul.f32 0.2, %v631_v47  ;;  %519 = vmax.xlane.f32.xlu0 %v518_v51  ;;  %vm634_vm2 = vcmp.gt.f32.partialorder %v631_v47, 0.0 }
 0x181   :  { %v640_v55 = vsel %vm634_vm2, %v631_v47, %v637_v53 }
 0x182   :  { %v1254_v56 = vsel %vm246_vm12, %v640_v55, -1e+30 }
 0x183   :  { %v650_v57 = vsel %vm34_vm1, %v1254_v56, -inf }
 0x184   :  { %651 = vmax.xlane.f32.xlu1 %v650_v57 }
 0x195   :  { %423 = vrot.lane.b32.xlu1 %v1131_v16, %s1048_s0  ;;  %421 = vrot.lane.b32.xlu0 %v1111_v9, %s1048_s0 }
 0x199   :  { %553 = vrot.lane.b32.xlu1 %v1111_v9, %s1049_s14 }
 0x1f3   :  { %v252_v58 = vpop.xlane.xlu1 %251 }
 0x1f4   :  { %v259_v59 = vsub.f32 %v1171_v49, %v252_v58 }
 0x1f6   :  { %v262_v60 = vmul.f32 1.442695, %v259_v59 }
 0x1f7   :  { %v380_v61 = vpop.xlane.xlu1 %379 }
 0x1f8   :  { %987 = vpow2.f32 %v262_v60  ;;  %v387_v63 = vsub.f32 %v1182_v54, %v380_v61  ;;  %v514_v0 = vpop.xlane.xlu0 %513 }
 0x1f9   :  { %v521_v2 = vsub.f32 %v1190_v62, %v514_v0 }
 0x1fa   :  { %v390_v3 = vmul.f32 1.442695, %v387_v63 }
 0x1fb   :  { %v524_v4 = vmul.f32 1.442695, %v521_v2 }
 0x1fc   :  { %989 = vpow2.f32 %v390_v3  ;;  %v255_v5 = vpop.xlane.xlu0 %254 }
 0x1fd   :  { %991 = vpow2.f32 %v524_v4  ;;  %v260_v21 = vsub.f32 %v1196_v1, %v255_v5 }
 0x1ff   :  { %v264_v30 = vmul.f32 1.442695, %v260_v21 }
 0x200   :  { %v383_v6 = vpop.xlane.xlu0 %382 }
 0x201   :  { %v388_v11 = vsub.f32 %v1209_v17, %v383_v6  ;;  %v517_v14 = vpop.xlane.xlu1 %516 }
 0x202   :  { %v988_v12 = vpop.eup %987  ;;  %v522_v33 = vsub.f32 %v1216_v24, %v517_v14 }
 0x203   :  { %v392_v13 = vmul.f32 1.442695, %v388_v11  ;;  %v1267_v49 = vmul.f32 %v988_v12, %v1161_v35 }
 0x204   :  { %v258_v18 = vpop.xlane.xlu0 %257  ;;  %v526_v38 = vmul.f32 1.442695, %v522_v33 }
 0x205   :  { %993 = vpow2.f32 %v392_v13  ;;  %v261_v54 = vsub.f32 %v1223_v29, %v258_v18  ;;  %v271_v62 = vsel %vm34_vm1, %v1267_v49, 0.0 }
 0x206   :  { %v990_v19 = vpop.eup %989  ;;  %272 = vadd.xlane.f32.xlu0 %v271_v62 }
 0x207   :  { %v992_v20 = vpop.eup %991  ;;  %v386_v22 = vpop.xlane.xlu1 %385  ;;  %v1274_v17 = vmul.f32 %v990_v19, %v1161_v35  ;;  %v266_v23 = vmul.f32 1.442695, %v261_v54 }
 0x208   :  { %v649_v25 = vpop.xlane.xlu0 %648  ;;  %v1277_v26 = vmul.f32 %v992_v20, %v1161_v35  ;;  %v389_v39 = vsub.f32 %v1234_v41, %v386_v22 }
 0x209   :  { %v654_v27 = vsub.f32 %v1229_v37, %v649_v25  ;;  %v399_v28 = vsel %vm34_vm1, %v1274_v17, 0.0  ;;  %995 = vpow2.f32 %v266_v23 }
 0x20a   :  { %400 = vadd.xlane.f32.xlu1 %v399_v28  ;;  %v533_v29 = vsel %vm34_vm1, %v1277_v26, 0.0 }
 0x20b   :  { %v658_v1 = vmul.f32 1.442695, %v654_v27  ;;  %534 = vadd.xlane.f32.xlu0 %v533_v29  ;;  %v646_v31 = vpop.xlane.xlu1 %645 }
 0x20c   :  { %v653_v34 = vsub.f32 %v1242_v45, %v646_v31  ;;  %v520_v36 = vpop.xlane.xlu0 %519  ;;  %v394_v45 = vmul.f32 1.442695, %v389_v39 }
 0x20d   :  { %997 = vpow2.f32 %v658_v1  ;;  %v523_v13 = vsub.f32 %v1248_v50, %v520_v36 }
 0x20e   :  { %v656_v32 = vmul.f32 1.442695, %v653_v34  ;;  %999 = vpow2.f32 %v264_v30 }
 0x20f   :  { %v994_v37 = vpop.eup %993  ;;  %v528_v14 = vmul.f32 1.442695, %v523_v13 }
 0x210   :  { %1001 = vpow2.f32 %v656_v32  ;;  %v1288_v42 = vmul.f32 %v994_v37, %v1178_v52  ;;  %v422_v43 = vpop.permute.xlu0 %421 }
 0x211   :  { %v652_v44 = vpop.xlane.xlu1 %651  ;;  %924 = vmatprep.subr.bf16.mxu0 %v422_v43  ;;  %1003 = vpow2.f32 %v526_v38 }
 0x212   :  { %v402_v24 = vsel %vm34_vm1, %v1288_v42, 0.0  ;;  %925 = vmatpush3.bf16.msra.mxu0 %v422_v43  ;;  %v655_v46 = vsub.f32 %v1254_v56, %v652_v44  ;;  %1005 = vpow2.f32 %v394_v45 }
 0x213   :  { %403 = vadd.xlane.f32.xlu0 %v402_v24  ;;  %v996_v47 = vpop.eup %995 }
 0x214   :  { %v660_v48 = vmul.f32 1.442695, %v655_v46  ;;  %v1301_v59 = vmul.f32 %v996_v47, %v1203_v10 }
 0x215   :  { %v424_v40 = vpop.permute.xlu1 %423 }
 0x216   :  { %926 = vmatprep.subr.bf16.mxu0 %v424_v40  ;;  %1007 = vpow2.f32 %v660_v48  ;;  %v277_v0 = vsel %vm34_vm1, %v1301_v59, 0.0 }
 0x217   :  { %v998_v41 = vpop.eup %997  ;;  %927 = vmatpush3.bf16.msra.mxu0 %v424_v40  ;;  %1009 = vpow2.f32 %v528_v14 }
 0x218   :  { %v1294_v51 = vmul.f32 %v998_v41, %v1178_v52  ;;  %v1000_v53 = vpop.eup %999 }
 0x219   :  { %v1296_v55 = vpop.permute.xlu1 %553  ;;  %v1310_v61 = vmul.f32 %v1000_v53, %v1178_v52 }
 0x21a   :  { %v1002_v57 = vpop.eup %1001  ;;  %v668_v58 = vsel %vm34_vm1, %v1294_v51, 0.0  ;;  %932 = vmatprep.subr.bf16.mxu1 %v1296_v55 }
 0x21b   :  { %669 = vadd.xlane.f32.xlu0 %v668_v58  ;;  %v1305_v56 = vmul.f32 %v1002_v57, %v1161_v35  ;;  %v1004_v63 = vpop.eup %1003  ;;  %v274_v2 = vsel %vm34_vm1, %v1310_v61, 0.0 }
 0x21c   :  { %v1317_v3 = vmul.f32 %v1004_v63, %v1178_v52  ;;  %v1006_v35 = vpop.eup %1005 }
 0x21d   :  { %v665_v60 = vsel %vm34_vm1, %v1305_v56, 0.0  ;;  %v1322_v5 = vmul.f32 %v1006_v35, %v1203_v10 }
 0x21e   :  { %666 = vadd.xlane.f32.xlu1 %v665_v60  ;;  %v536_v4 = vsel %vm34_vm1, %v1317_v3, 0.0 }
 0x21f   :  { %278 = vadd.xlane.f32.xlu0 %v277_v0  ;;  %v405_v11 = vsel %vm34_vm1, %v1322_v5, 0.0 }
 0x220   :  { %v1008_v6 = vpop.eup %1007 }
 0x221   :  { %v1327_v12 = vmul.f32 %v1008_v6, %v1203_v10  ;;  %v1010_v18 = vpop.eup %1009 }
 0x222   :  { %275 = vadd.xlane.f32.xlu1 %v274_v2  ;;  %v1336_v54 = vmul.f32 %v1010_v18, %v1203_v10 }
 0x223   :  { %v671_v52 = vsel %vm34_vm1, %v1327_v12, 0.0 }
 0x224   :  { %v539_v62 = vsel %vm34_vm1, %v1336_v54, 0.0 }
 0x226   :  { %537 = vadd.xlane.f32.xlu1 %v536_v4 }
 0x22a   :  { %406 = vadd.xlane.f32.xlu1 %v405_v11 }
 0x22e   :  { %672 = vadd.xlane.f32.xlu1 %v671_v52 }
 0x235   :  { %685 = vrot.lane.b32.xlu0 %v1111_v9, %s1050_s15 }
 0x23f   :  { %555 = vrot.lane.b32.xlu1 %v1131_v16, %s1049_s14 }
 0x254   :  { %540 = vadd.xlane.f32.xlu0 %v539_v62 }
 0x26a   :  { %687 = vrot.lane.b32.xlu0 %v1131_v16, %s1050_s15 }
 0x26e   :  { %793 = vrot.lane.b32.xlu0 %v1101_v7, %s1051_s16 }
 0x293   :  { %v273_v19 = vpop.xlane.xlu0 %272 }
 0x294   :  { %v280_v28 = vmax.f32 %v273_v19, 1e-09 }
 0x297   :  { %v401_v20 = vpop.xlane.xlu1 %400 }
 0x298   :  { %v535_v9 = vpop.xlane.xlu0 %534  ;;  %v408_v21 = vmax.f32 %v401_v20, 1e-09 }
 0x299   :  { %v542_v33 = vmax.f32 %v535_v9, 1e-09 }
 0x29a   :  { %1011 = vrcp.f32 %v408_v21 }
 0x2a0   :  { %v404_v50 = vpop.xlane.xlu0 %403 }
 0x2a1   :  { %v409_v22 = vmax.f32 %v404_v50, 1e-09 }
 0x2a3   :  { %1013 = vrcp.f32 %v409_v22 }
 0x2a4   :  { %v1012_v25 = vpop.eup %1011 }
 0x2a5   :  { %v414_v1 = vmul.f32 %v1012_v25, %v1274_v17 }
 0x2a8   :  { %v670_v23 = vpop.xlane.xlu0 %669 }
 0x2a9   :  { %v675_v43 = vmax.f32 %v670_v23, 1e-09 }
 0x2ab   :  { %v667_v27 = vpop.xlane.xlu1 %666 }
 0x2ac   :  { %v279_v10 = vpop.xlane.xlu0 %278  ;;  %v674_v37 = vmax.f32 %v667_v27, 1e-09 }
 0x2ad   :  { %v1014_v29 = vpop.eup %1013  ;;  %v282_v30 = vmax.f32 %v279_v10, 1e-09 }
 0x2ae   :  { %v415_v31 = vmul.f32 %v1014_v29, %v1288_v42 }
 0x2af   :  { %1015 = vrcp.f32 %v282_v30  ;;  %v276_v16 = vpop.xlane.xlu1 %275 }
 0x2b0   :  { %1017 = vrcp.f32 %v280_v28  ;;  %v281_v34 = vmax.f32 %v276_v16, 1e-09  ;;  %v686_v36 = vpop.permute.xlu0 %685  ;;  %v417_v32 = vpack.c.bf16 %v415_v31, %v414_v1 }
 0x2b1   :  { %940 = vmatprep.subr.bf16.mxu0 %v686_v36 }
 0x2b2   :  { %1019 = vrcp.f32 %v281_v34  ;;  %928 = vmatprep.mubr.msk.bf16.mxu0 %vm34_vm1, %v417_v32 }
 0x2b3   :  { %v538_v38 = vpop.xlane.xlu1 %537  ;;  %1021 = vrcp.f32 %v542_v33 }
 0x2b4   :  { %v543_v39 = vmax.f32 %v538_v38, 1e-09 }
 0x2b6   :  { %1023 = vrcp.f32 %v543_v39 }
 0x2b7   :  { %1025 = vrcp.f32 %v674_v37  ;;  %v407_v17 = vpop.xlane.xlu1 %406 }
 0x2b8   :  { %v410_v42 = vmax.f32 %v407_v17, 1e-09  ;;  %1027 = vrcp.f32 %v675_v43 }
 0x2b9   :  { %v1016_v44 = vpop.eup %1015 }
 0x2ba   :  { %v1018_v24 = vpop.eup %1017  ;;  %1029 = vrcp.f32 %v410_v42  ;;  %v288_v46 = vmul.f32 %v1016_v44, %v1301_v59 }
 0x2bb   :  { %v673_v40 = vpop.xlane.xlu1 %672  ;;  %v286_v47 = vmul.f32 %v1018_v24, %v1267_v49 }
 0x2bc   :  { %v1020_v45 = vpop.eup %1019  ;;  %v290_v58 = vpack.c.bf16 %v288_v46, %v288_v46 }
 0x2bd   :  { %v287_v41 = vmul.f32 %v1020_v45, %v1310_v61  ;;  %v1022_v48 = vpop.eup %1021 }
 0x2be   :  { %v548_v63 = vmul.f32 %v1022_v48, %v1277_v26 }
 0x2bf   :  { %v289_v53 = vpack.c.bf16 %v287_v41, %v286_v47  ;;  %v556_v2 = vpop.permute.xlu1 %555 }
 0x2c0   :  { %v1024_v57 = vpop.eup %1023 }
 0x2c1   :  { %v1026_v60 = vpop.eup %1025  ;;  %920 = vmatprep.mubr.msk.bf16.mxu1 %vm34_vm1, %v289_v53  ;;  %v549_v0 = vmul.f32 %v1024_v57, %v1317_v3 }
 0x2c2   :  { %921 = vmatmul.mubr.msk.bf16.vlgmr.msra.gmra.mrb[8].mxu1 %vm34_vm1, %v290_v58  ;;  %v1028_v59 = vpop.eup %1027  ;;  %v680_v61 = vmul.f32 %v1026_v60, %v1305_v56 }
 0x2c3   :  { %933 = vmatpush3.bf16.msra.mxu1 %v1296_v55  ;;  %v551_v49 = vpack.c.bf16 %v549_v0, %v548_v63  ;;  %v681_v6 = vmul.f32 %v1028_v59, %v1294_v51  ;;  %v676_v55 = vmax.f32 %v673_v40, 1e-09 }
 0x2c4   :  { %v1030_v35 = vpop.eup %1029  ;;  %934 = vmatprep.subr.bf16.mxu1 %v556_v2 }
 0x2c5   :  { %v416_v4 = vmul.f32 %v1030_v35, %v1322_v5  ;;  %936 = vmatprep.mubr.msk.bf16.mxu1 %vm34_vm1, %v551_v49  ;;  %v683_v3 = vpack.c.bf16 %v681_v6, %v680_v61  ;;  %1031 = vrcp.f32 %v676_v55 }
 0x2c7   :  { %v418_v26 = vpack.c.bf16 %v416_v4, %v416_v4  ;;  %935 = vmatpush3.bf16.msra.mxu1 %v556_v2 }
 0x2c9   :  { %929 = vmatmul.mubr.msk.bf16.vlgmr.msra.gmra.mrb[4].mxu0 %vm34_vm1, %v418_v26 }
 0x2ca   :  { %941 = vmatpush3.bf16.msra.mxu0 %v686_v36  ;;  %944 = vmatprep.mubr.msk.bf16.mxu0 %vm34_vm1, %v683_v3 }
 0x2cf   :  { %v1032_v11 = vpop.eup %1031 }
 0x2d0   :  { %v682_v13 = vmul.f32 %v1032_v11, %v1327_v12 }
 0x2d2   :  { %v684_v51 = vpack.c.bf16 %v682_v13, %v682_v13 }
 0x2e1   :  { %v541_v52 = vpop.xlane.xlu0 %540 }
 0x2e2   :  { %v544_v56 = vmax.f32 %v541_v52, 1e-09 }
 0x2e4   :  { %1033 = vrcp.f32 %v544_v56 }
 0x2e5   :  { %v688_v5 = vpop.permute.xlu0 %687 }
 0x2e6   :  { %942 = vmatprep.subr.bf16.mxu0 %v688_v5 }
 0x2e7   :  { %943 = vmatpush3.bf16.msra.mxu0 %v688_v5 }
 0x2e9   :  { %v794_v16 = vpop.permute.xlu0 %793 }
 0x2ea   :  { %945 = vmatmul.mubr.msk.bf16.vlgmr.msra.gmra.mrb[8].mxu0 %vm34_vm1, %v684_v51 }
 0x2ee   :  { %v1034_v14 = vpop.eup %1033 }
 0x2ef   :  { %v550_v18 = vmul.f32 %v1034_v14, %v1336_v54 }
 0x2f1   :  { %v552_v62 = vpack.c.bf16 %v550_v18, %v550_v18 }
 0x2f3   :  { %937 = vmatmul.mubr.msk.bf16.vlgmr.msra.gmra.mrb[12].mxu1 %vm34_vm1, %v552_v62 }
 0x395   :  { %v922_v19 = vpop.f32.mrb[8].mxu1 }
 0x396   :  { %v333_v20 = vpop.f32.mrb[9].mxu1 }
 0x397   :  { %v923_v12 = vpop.f32.mrb[10].mxu1 }
 0x398   :  { %v336_v9 = vpop.f32.mrb[11].mxu1 }
 0x39c   :  { %v930_v21 = vpop.f32.mrb[4].mxu0 }
 0x39d   :  { %752 = vrot.lane.b32.xlu1 %v930_v21, %s1052_s17  ;;  %v467_v50 = vpop.f32.mrb[5].mxu0 }
 0x39e   :  { %v931_v22 = vpop.f32.mrb[6].mxu0 }
 0x39f   :  { %v470_v23 = vpop.f32.mrb[7].mxu0 }
 0x3a0   :  { %750 = vrot.lane.b32.xlu0 %v470_v23, %s1052_s17 }
 0x3a1   :  { %748 = vrot.lane.b32.xlu1 %v467_v50, %s1052_s17 }
 0x3bd   :  { %v946_v54 = vpop.f32.mrb[8].mxu0 }
 0x3be   :  { %776 = vrot.lane.b32.xlu1 %v946_v54, %s1053_s18  ;;  %v731_v25 = vpop.f32.mrb[9].mxu0 }
 0x3bf   :  { %v947_v27 = vpop.f32.mrb[10].mxu0 }
 0x3c0   :  { %v734_v28 = vpop.f32.mrb[11].mxu0 }
 0x3c2   :  { %772 = vrot.lane.b32.xlu1 %v731_v25, %s1053_s18 }
 0x3c6   :  { %v938_v7 = vpop.f32.mrb[12].mxu1 }
 0x3c7   :  { %764 = vrot.lane.b32.xlu0 %v938_v7, %s1054_s19  ;;  %v599_v10 = vpop.f32.mrb[13].mxu1 }
 0x3c8   :  { %v939_v29 = vpop.f32.mrb[14].mxu1 }
 0x3c9   :  { %v602_v30 = vpop.f32.mrb[15].mxu1 }
 0x3ca   :  { %762 = vrot.lane.b32.xlu1 %v602_v30, %s1054_s19 }
 0x3cb   :  { %760 = vrot.lane.b32.xlu0 %v599_v10, %s1054_s19 }
 0x3ce   :  { %795 = vrot.lane.b32.xlu1 %v1106_v8, %s1051_s16 }
 0x3cf   :  { %774 = vrot.lane.b32.xlu0 %v734_v28, %s1053_s18 }
 0x3d3   :  { %797 = vrot.lane.b32.xlu0 %v1128_v15, %s1051_s16  ;;  %v856_v15 = vld [vmem:[%s1390_s4] ss:$0 sm:$0xff] }
 0x40f   :  { %v753_v1 = vpop.permute.xlu1 %752 }
 0x410   :  { %v784_v24 = vsel %vm781_vm3, %v922_v19, %v753_v1 }
 0x412   :  { %v751_v34 = vpop.permute.xlu0 %750 }
 0x413   :  { %v749_v31 = vpop.permute.xlu1 %748  ;;  %v783_v17 = vsel %vm781_vm3, %v336_v9, %v751_v34 }
 0x414   :  { %v782_v38 = vsel %vm781_vm3, %v333_v20, %v749_v31 }
 0x430   :  { %v777_v33 = vpop.permute.xlu1 %776 }
 0x434   :  { %v773_v36 = vpop.permute.xlu1 %772 }
 0x439   :  { %v765_v32 = vpop.permute.xlu0 %764 }
 0x43a   :  { %v788_v40 = vsel %vm785_vm4, %v784_v24, %v765_v32 }
 0x43b   :  { %v792_v60 = vsel %vm789_vm5, %v788_v40, %v777_v33 }
 0x43c   :  { %v763_v37 = vpop.permute.xlu1 %762 }
 0x43d   :  { %v761_v39 = vpop.permute.xlu0 %760  ;;  %v787_v45 = vsel %vm785_vm4, %v783_v17, %v763_v37 }
 0x43e   :  { %v786_v43 = vsel %vm785_vm4, %v782_v38, %v761_v39 }
 0x43f   :  { %v790_v8 = vsel %vm789_vm5, %v786_v43, %v773_v36 }
 0x440   :  { %v802_v42 = vadd.f32 %v794_v16, %v790_v8  ;;  %v796_v44 = vpop.permute.xlu1 %795 }
 0x441   :  { %v775_v46 = vpop.permute.xlu0 %774 }
 0x442   :  { %v791_v47 = vsel %vm789_vm5, %v787_v45, %v775_v46  ;;  %v812_v41 = vadd.f32 %v856_v15, %v802_v42 }
 0x443   :  { %v803_v48 = vadd.f32 %v796_v44, %v791_v47 }
 0x444   :  { %v818_v53 = vmin.f32 %v812_v41, 0.0  ;;  %vm815_vm6 = vcmp.gt.f32.partialorder %v812_v41, 0.0 }
 0x445   :  { %v813_v57 = vadd.f32 %v856_v15, %v803_v48  ;;  %v798_v58 = vpop.permute.xlu0 %797 }
 0x446   :  { %v821_v63 = vmul.f32 1.442695, %v818_v53  ;;  %v804_v0 = vadd.f32 %v798_v58, %v792_v60 }
 0x447   :  { %v819_v2 = vmin.f32 %v813_v57, 0.0  ;;  %vm816_vm7 = vcmp.gt.f32.partialorder %v813_v57, 0.0 }
 0x448   :  { %1035 = vpow2.f32 %v821_v63  ;;  %v814_v59 = vadd.f32 %v856_v15, %v804_v0 }
 0x449   :  { %v823_v49 = vmul.f32 1.442695, %v819_v2 }
 0x44a   :  { %v820_v35 = vmin.f32 %v814_v59, 0.0  ;;  %vm817_vm8 = vcmp.gt.f32.partialorder %v814_v59, 0.0 }
 0x44b   :  { %1037 = vpow2.f32 %v823_v49 }
 0x44c   :  { %v825_v61 = vmul.f32 1.442695, %v820_v35 }
 0x44e   :  { %1039 = vpow2.f32 %v825_v61 }
 0x452   :  { %v1036_v4 = vpop.eup %1035 }
 0x453   :  { %v857_v6 = vadd.f32 -1.0, %v1036_v4 }
 0x455   :  { %v1038_v26 = vpop.eup %1037  ;;  %v830_v3 = vsel %vm815_vm6, %v812_v41, %v857_v6 }
 0x456   :  { %833 = vst.msk [vmem:[%s1391_s5] sm:$0xff] %vm34_vm1, %v830_v3  ;;  %v858_v55 = vadd.f32 -1.0, %v1038_v26 }
 0x458   :  { %v1040_v11 = vpop.eup %1039  ;;  %v831_v52 = vsel %vm816_vm7, %v813_v57, %v858_v55 }
 0x459   :  { %834 = vst.msk [vmem:[%s1391_s5 + $0x8] sm:$0xff] %vm34_vm1, %v831_v52  ;;  %v859_v56 = vadd.f32 -1.0, %v1040_v11 }
 0x45b   :  { %v832_v13 = vsel %vm817_vm8, %v814_v59, %v859_v56 }
 0x45c   :  { %835 = vst.msk [vmem:[%s1391_s5 + $0x10] sm:$0xff] %vm34_vm1, %v832_v13 }

// kernel: gat_forward.10
= control target key start
LH: loop header
LB: loop body
LE: loop exit
PB: predicated region body
PF: predicated region fallthrough
CT: control target
= control target key end

     0   :  { %vm17_vm0 = vcmask 261120   ;;  %s171_s1 = inlined_call_operand.vmem [shape: f32[32,128], index: 1, kind: input, shape index: {}]   ;;  %s172_s0 = inlined_call_operand.vmem [shape: f32[16,32], index: 0, kind: input, shape index: {}]   ;;  %s173_s2 = inlined_call_operand.vmem [shape: f32[16,128], index: 2, kind: output, shape index: {}]  }
   0x1   :  { %v13_v0 = vld [vmem:[%s171_s1] sm:$0xff]  ;;  %v14_v1 = vld [vmem:[%s171_s1 + $0x8] sm:$0xff]  ;;  %v15_v2 = vld [vmem:[%s171_s1 + $0x10] sm:$0xff] }
   0x2   :  { %v124_v3 = vpack.c.bf16 %v14_v1, %v13_v0  ;;  %v16_v4 = vld [vmem:[%s171_s1 + $0x18] sm:$0xff]  ;;  %v11_v5 = vld [vmem:[%s172_s0] sm:$0xff]  ;;  %v12_v7 = vld [vmem:[%s172_s0 + $0x8] sm:$0xff] }
   0x3   :  { %v128_v6 = vpack.c.bf16 %v16_v4, %v15_v2  ;;  %121 = vmatprep.mubr.msk.f32.mxu0 %vm17_vm0, %v11_v5 }
   0x4   :  { %125 = vmatprep.subr.bf16.mxu0 %v124_v3 }
   0x5   :  { %127 = vmatpush3.bf16.msra.mxu0 %v124_v3 }
   0x6   :  { %129 = vmatprep.subr.bf16.mxu0 %v128_v6 }
   0x9   :  { %131 = vmatpush3.bf16.msra.mxu0 %v128_v6 }
   0xc   :  { %122 = vmatmul.mubr.msk.f32.vlgmr.msra.gmra.mrb[0].mxu0 %vm17_vm0, %v12_v7 }
  0xdf   :  { %v123_v8 = vpop.f32.mrb[0].mxu0 }
  0xe0   :  { %100 = vst [vmem:[%s173_s2 + $0x8] sm:$0xff] %v123_v8  ;;  %v90_v9 = vpop.f32.mrb[1].mxu0 }
  0xe1   :  { %99 = vst [vmem:[%s173_s2] sm:$0xff] %v90_v9 }

// kernel: gat_forward.9
= control target key start
LH: loop header
LB: loop body
LE: loop exit
PB: predicated region body
PF: predicated region fallthrough
CT: control target
= control target key end

     0   :  { %vm31_vm0 = vcmask 261120   ;;  %v830_v3 = vmov 0.0|0.0   ;;  %vm831_vm1 = vmmov 0   ;;  %v832_v4 = vmov 0.0   ;;  %s838_s10 = smov 112   ;;  %s839_s11 = smov 104   ;;  %s1066_s3 = inlined_call_operand.vmem [shape: f32[32,4], index: 3, kind: input, shape index: {}]   ;;  %s1067_s1 = inlined_call_operand.vmem [shape: f32[24,128], index: 1, kind: input, shape index: {}]   ;;  %s1068_s2 = inlined_call_operand.vmem [shape: f32[4,32], index: 2, kind: input, shape index: {}]   ;;  %s1069_s0 = inlined_call_operand.vmem [shape: f32[16,24], index: 0, kind: input, shape index: {}]   ;;  %s1070_s4 = inlined_call_operand.vmem [shape: f32[1,32], index: 4, kind: input, shape index: {}]   ;;  %s1071_s5 = inlined_call_operand.vmem [shape: f32[16,32], index: 5, kind: output, shape index: {}]  }
   0x1   :  { %v114_v0 = vld [vmem:[%s1066_s3] sm:$0xff]  ;;  %v115_v1 = vld [vmem:[%s1066_s3 + $0x8] sm:$0xff]  ;;  %v116_v2 = vld [vmem:[%s1066_s3 + $0x10] sm:$0xff]  ;;  %762 = vmatprep.subr.bf16.mxu0 %v830_v3  ;;  %716 = vmatprep.mubr.msk.f32.mxu0 %vm831_vm1, %v832_v4  ;;  %v833_v9 = vmov 1   ;;  %v834_v10 = vmov 0   ;;  %v835_v19 = vmov 2   ;;  %v209_v21 = vlaneseq }
   0x2   :  { %v766_v5 = vpack.c.bf16 %v115_v1, %v114_v0  ;;  %v117_v6 = vld [vmem:[%s1066_s3 + $0x18] sm:$0xff]  ;;  %v891_v7 = vld [vmem:[%s1067_s1] sm:$0xff]  ;;  %v896_v8 = vld [vmem:[%s1067_s1 + $0x8] sm:$0xff]  ;;  %789 = vset.pattern.permute.xlu1 %v833_v9  ;;  %788 = vset.pattern.permute.xlu0 %v834_v10  ;;  %v836_v20 = vmov 3   ;;  %vm225_vm6 = vcmask 195584   ;;  %vm258_vm14 = vcmask 1043456  }
   0x3   :  { %v770_v11 = vpack.c.bf16 %v117_v6, %v116_v2  ;;  %727 = vmatprep.mubr.msk.f32.mxu1 %vm31_vm0, %v891_v7  ;;  %v902_v12 = vpack.c.bf16 %v896_v8, %v891_v7  ;;  %vm764_vm2 = vmpackc.low %vm31_vm0, %vm31_vm0  ;;  %v911_v13 = vld [vmem:[%s1067_s1 + $0x10] sm:$0xff]  ;;  %v30_v14 = vld [vmem:[%s1068_s2] sm:$0xf]  ;;  %v210_v22 = vshrl.u32 %v209_v21, 7  ;;  %s840_s12 = smov 8   ;;  %s841_s13 = smov 16  }
   0x4   :  { %767 = vmatprep.subr.bf16.mxu1 %v766_v5  ;;  %v936_v27 = vld [vmem:[%s1069_s0 + $0x8] sm:$0xff]  ;;  %v942_v37 = vld [vmem:[%s1069_s0] sm:$0xff]  ;;  %s837_s0 = smov 120   ;;  %s842_s14 = smov 24   ;;  %vm632_vm15 = vcmask 64512  }
   0x5   :  { %769 = vmatpush3.bf16.msra.mxu1 %v766_v5  ;;  %765 = vmatpush3.bf16.xpose.msk.msra.mxu0 %vm764_vm2, %v902_v12  ;;  %v313_v23 = vsub.s32 1, %v210_v22  ;;  %v211_v24 = vsub.s32 0, %v210_v22  ;;  %vm222_vm3 = vcmp.gt.f32.partialorder %v936_v27, 0.0  ;;  %v416_v36 = vsub.s32 2, %v210_v22  ;;  %s843_s15 = smov 96  }
   0x6   :  { %771 = vmatprep.subr.bf16.mxu1 %v770_v11  ;;  %714 = vmatprep.subr.mxu0 %v832_v4  ;;  %vm221_vm7 = vcmp.gt.f32.partialorder %v942_v37, 0.0  ;;  %v517_v51 = vsub.s32 3, %v210_v22  ;;  %v979_v22 = vpack.c.bf16 %v911_v13, %v911_v13 }
   0x9   :  { %773 = vmatpush3.bf16.msra.mxu1 %v770_v11 }
   0xa   :  { %730 = vmatprep.subr.bf16.mxu1 %v832_v4 }
   0xc   :  { %728 = vmatmul.mubr.msk.f32.vlgmr.msra.gmra.mrb[0].mxu1 %vm31_vm0, %v896_v8 }
   0xd   :  { %715 = vmatpush3.xpose.msk.msra.mxu0 %vm31_vm0, %v911_v13  ;;  %731 = vmatpush3.bf16.msra.mxu1 %v902_v12 }
   0xe   :  { %738 = vmatprep.subr.bf16.mxu0 %v832_v4  ;;  %732 = vmatprep.subr.bf16.mxu1 %v832_v4 }
   0xf   :  { %734 = vmatprep.mubr.msk.bf16.mxu1 %vm831_vm1, %v832_v4 }
  0x10   :  { %717 = vmatmul.mubr.msk.f32.vlgmr.msra.gmra.mrb[0].mxu0 %vm31_vm0, %v30_v14 }
  0x11   :  { %742 = vmatprep.mubr.msk.bf16.mxu0 %vm831_vm1, %v832_v4 }
  0xdf   :  { %v729_v15 = vpop.f32.mrb[0].mxu1 }
  0xe0   :  { %308 = vperm.xlu1 %789, %v729_v15   ;;  %206 = vperm.xlu0 %788, %v729_v15   ;;  %v190_v16 = vpop.f32.mrb[1].mxu1 }
  0xe3   :  { %v929_v17 = vpop.f32.mrb[0].mxu0 }
  0xe4   :  { %304 = vperm.xlu1 %789, %v190_v16   ;;  %201 = vperm.xlu0 %788, %v190_v16   ;;  %v718_v18 = vpop.f32.mrb[1].mxu0  ;;  %v314_v25 = vrot.slane %v929_v17, %v313_v23  ;;  %v212_v26 = vrot.slane %v929_v17, %v211_v24  ;;  %v417_v46 = vrot.slane %v929_v17, %v416_v36 }
  0xe5   :  { %v518_v61 = vrot.slane %v929_v17, %v517_v51 }
  0xe8   :  { %790 = vset.pattern.permute.xlu1 %v835_v19  ;;  %791 = vset.pattern.permute.xlu0 %v835_v19 }
  0xe9   :  { %411 = vperm.xlu1 %790, %v729_v15   ;;  %407 = vperm.xlu0 %791, %v190_v16  }
  0xed   :  { %792 = vset.pattern.permute.xlu1 %v836_v20  ;;  %793 = vset.pattern.permute.xlu0 %v836_v20 }
  0xee   :  { %508 = vperm.xlu1 %792, %v190_v16   ;;  %512 = vperm.xlu0 %793, %v729_v15  }
 0x15f   :  { %v309_v28 = vpop.permute.xlu1 %308  ;;  %v207_v29 = vpop.permute.xlu0 %206 }
 0x160   :  { %v316_v30 = vadd.f32 %v314_v25, %v309_v28  ;;  %v214_v31 = vadd.f32 %v212_v26, %v207_v29 }
 0x162   :  { %v320_v32 = vmul.f32 0.2, %v316_v30  ;;  %v218_v33 = vmul.f32 0.2, %v214_v31  ;;  %vm216_vm4 = vcmp.gt.f32.partialorder %v214_v31, 0.0  ;;  %vm318_vm5 = vcmp.gt.f32.partialorder %v316_v30, 0.0 }
 0x163   :  { %v305_v34 = vpop.permute.xlu1 %304  ;;  %v202_v35 = vpop.permute.xlu0 %201 }
 0x164   :  { %v315_v38 = vadd.f32 %v314_v25, %v305_v34  ;;  %v213_v39 = vadd.f32 %v212_v26, %v202_v35  ;;  %v220_v40 = vsel %vm216_vm4, %v214_v31, %v218_v33  ;;  %v322_v41 = vsel %vm318_vm5, %v316_v30, %v320_v32 }
 0x165   :  { %v946_v42 = vsel %vm222_vm3, %v220_v40, -1e+30  ;;  %v954_v47 = vsel %vm222_vm3, %v322_v41, -1e+30 }
 0x166   :  { %v319_v43 = vmul.f32 0.2, %v315_v38  ;;  %v217_v44 = vmul.f32 0.2, %v213_v39  ;;  %v229_v45 = vsel %vm225_vm6, %v946_v42, -inf  ;;  %vm215_vm8 = vcmp.gt.f32.partialorder %v213_v39, 0.0 }
 0x167   :  { %230 = vmax.xlane.f32.xlu0 %v229_v45  ;;  %vm317_vm9 = vcmp.gt.f32.partialorder %v315_v38, 0.0  ;;  %v328_v56 = vsel %vm225_vm6, %v954_v47, -inf }
 0x168   :  { %v412_v48 = vpop.permute.xlu1 %411  ;;  %v408_v49 = vpop.permute.xlu0 %407  ;;  %v219_v50 = vsel %vm215_vm8, %v213_v39, %v217_v44  ;;  %v321_v52 = vsel %vm317_vm9, %v315_v38, %v319_v43 }
 0x169   :  { %v419_v53 = vadd.f32 %v417_v46, %v412_v48  ;;  %v418_v54 = vadd.f32 %v417_v46, %v408_v49  ;;  %v223_v55 = vsel %vm221_vm7, %v219_v50, -1e+30  ;;  %v323_v58 = vsel %vm221_vm7, %v321_v52, -1e+30 }
 0x16a   :  { %v226_v57 = vsel %vm225_vm6, %v223_v55, -inf  ;;  %v325_v5 = vsel %vm225_vm6, %v323_v58, -inf }
 0x16b   :  { %v423_v59 = vmul.f32 0.2, %v419_v53  ;;  %v422_v60 = vmul.f32 0.2, %v418_v54  ;;  %329 = vmax.xlane.f32.xlu0 %v328_v56  ;;  %227 = vmax.xlane.f32.xlu1 %v226_v57  ;;  %vm421_vm10 = vcmp.gt.f32.partialorder %v419_v53, 0.0  ;;  %vm420_vm11 = vcmp.gt.f32.partialorder %v418_v54, 0.0 }
 0x16d   :  { %v509_v62 = vpop.permute.xlu1 %508  ;;  %v513_v63 = vpop.permute.xlu0 %512  ;;  %v425_v0 = vsel %vm421_vm10, %v419_v53, %v423_v59  ;;  %v424_v1 = vsel %vm420_vm11, %v418_v54, %v422_v60 }
 0x16e   :  { %v519_v2 = vadd.f32 %v518_v61, %v509_v62  ;;  %v520_v3 = vadd.f32 %v518_v61, %v513_v63  ;;  %v427_v6 = vsel %vm222_vm3, %v425_v0, -1e+30  ;;  %v426_v10 = vsel %vm221_vm7, %v424_v1, -1e+30 }
 0x16f   :  { %326 = vmax.xlane.f32.xlu1 %v325_v5  ;;  %v431_v9 = vsel %vm225_vm6, %v427_v6, -inf  ;;  %v428_v15 = vsel %vm225_vm6, %v426_v10, -inf }
 0x170   :  { %v523_v11 = vmul.f32 0.2, %v519_v2  ;;  %v524_v14 = vmul.f32 0.2, %v520_v3  ;;  %432 = vmax.xlane.f32.xlu0 %v431_v9  ;;  %vm522_vm12 = vcmp.gt.f32.partialorder %v520_v3, 0.0  ;;  %vm521_vm13 = vcmp.gt.f32.partialorder %v519_v2, 0.0 }
 0x172   :  { %v526_v16 = vsel %vm522_vm12, %v520_v3, %v524_v14  ;;  %v525_v17 = vsel %vm521_vm13, %v519_v2, %v523_v11 }
 0x173   :  { %429 = vmax.xlane.f32.xlu1 %v428_v15  ;;  %v528_v18 = vsel %vm222_vm3, %v526_v16, -1e+30  ;;  %v527_v19 = vsel %vm221_vm7, %v525_v17, -1e+30  ;;  %v260_v15 = vsel %vm258_vm14, %v979_v22, 0 }
 0x174   :  { %v532_v20 = vsel %vm225_vm6, %v528_v18, -inf  ;;  %v529_v21 = vsel %vm225_vm6, %v527_v19, -inf  ;;  %733 = vmatpush3.bf16.msra.mxu1 %v260_v15 }
 0x175   :  { %533 = vmax.xlane.f32.xlu0 %v532_v20  ;;  %746 = vmatprep.subr.bf16.mxu1 %v832_v4 }
 0x177   :  { %530 = vmax.xlane.f32.xlu1 %v529_v21 }
 0x188   :  { %354 = vrot.lane.b32.xlu1 %v902_v12, %s837_s0 }
 0x18b   :  { %356 = vrot.lane.b32.xlu0 %v979_v22, %s837_s0 }
 0x18c   :  { %455 = vrot.lane.b32.xlu1 %v902_v12, %s838_s10 }
 0x190   :  { %556 = vrot.lane.b32.xlu1 %v902_v12, %s839_s11 }
 0x1f4   :  { %v231_v23 = vpop.xlane.xlu0 %230 }
 0x1f5   :  { %v233_v24 = vsub.f32 %v946_v42, %v231_v23 }
 0x1f7   :  { %v236_v25 = vmul.f32 1.442695, %v233_v24 }
 0x1f8   :  { %v330_v26 = vpop.xlane.xlu0 %329  ;;  %v228_v13 = vpop.xlane.xlu1 %227 }
 0x1f9   :  { %794 = vpow2.f32 %v236_v25  ;;  %v332_v28 = vsub.f32 %v954_v47, %v330_v26  ;;  %v232_v29 = vsub.f32 %v223_v55, %v228_v13 }
 0x1fb   :  { %v335_v30 = vmul.f32 1.442695, %v332_v28  ;;  %v234_v31 = vmul.f32 1.442695, %v232_v29 }
 0x1fc   :  { %v327_v32 = vpop.xlane.xlu1 %326 }
 0x1fd   :  { %796 = vpow2.f32 %v335_v30  ;;  %v331_v33 = vsub.f32 %v323_v58, %v327_v32  ;;  %v433_v34 = vpop.xlane.xlu0 %432 }
 0x1fe   :  { %798 = vpow2.f32 %v234_v31  ;;  %v435_v35 = vsub.f32 %v427_v6, %v433_v34 }
 0x1ff   :  { %v333_v36 = vmul.f32 1.442695, %v331_v33 }
 0x200   :  { %v438_v12 = vmul.f32 1.442695, %v435_v35  ;;  %v430_v38 = vpop.xlane.xlu1 %429 }
 0x201   :  { %800 = vpow2.f32 %v333_v36  ;;  %v434_v39 = vsub.f32 %v426_v10, %v430_v38 }
 0x202   :  { %802 = vpow2.f32 %v438_v12  ;;  %v534_v40 = vpop.xlane.xlu0 %533 }
 0x203   :  { %v795_v41 = vpop.eup %794  ;;  %v436_v42 = vmul.f32 1.442695, %v434_v39  ;;  %v536_v43 = vsub.f32 %v528_v18, %v534_v40 }
 0x204   :  { %v531_v44 = vpop.xlane.xlu1 %530  ;;  %v990_v45 = vmul.f32 %v795_v41, %v936_v27 }
 0x205   :  { %804 = vpow2.f32 %v436_v42  ;;  %v539_v46 = vmul.f32 1.442695, %v536_v43  ;;  %v535_v47 = vsub.f32 %v527_v19, %v531_v44 }
 0x206   :  { %v243_v48 = vsel %vm225_vm6, %v990_v45, 0.0  ;;  %v357_v51 = vpop.permute.xlu0 %356 }
 0x207   :  { %v797_v49 = vpop.eup %796  ;;  %806 = vpow2.f32 %v539_v46  ;;  %v537_v50 = vmul.f32 1.442695, %v535_v47  ;;  %244 = vadd.xlane.f32.xlu0 %v243_v48  ;;  %v363_v57 = vsel %vm258_vm14, %v357_v51, 0 }
 0x208   :  { %v799_v52 = vpop.eup %798  ;;  %v995_v53 = vmul.f32 %v797_v49, %v936_v27  ;;  %v355_v54 = vpop.permute.xlu1 %354 }
 0x209   :  { %808 = vpow2.f32 %v537_v50  ;;  %v998_v55 = vmul.f32 %v799_v52, %v942_v37  ;;  %739 = vmatpush3.bf16.msra.mxu0 %v355_v54 }
 0x20a   :  { %v342_v56 = vsel %vm225_vm6, %v995_v53, 0.0  ;;  %740 = vmatprep.subr.bf16.mxu0 %v832_v4 }
 0x20b   :  { %v801_v58 = vpop.eup %800  ;;  %343 = vadd.xlane.f32.xlu0 %v342_v56  ;;  %v240_v59 = vsel %vm225_vm6, %v998_v55, 0.0 }
 0x20c   :  { %v803_v60 = vpop.eup %802  ;;  %241 = vadd.xlane.f32.xlu1 %v240_v59  ;;  %v337_v61 = vmul.f32 %v801_v58, %v942_v37 }
 0x20d   :  { %v1008_v62 = vmul.f32 %v803_v60, %v936_v27  ;;  %741 = vmatpush3.bf16.msra.mxu0 %v363_v57 }
 0x20e   :  { %v339_v63 = vsel %vm225_vm6, %v337_v61, 0.0  ;;  %754 = vmatprep.subr.bf16.mxu0 %v832_v4 }
 0x20f   :  { %v805_v0 = vpop.eup %804  ;;  %v445_v1 = vsel %vm225_vm6, %v1008_v62, 0.0 }
 0x210   :  { %340 = vadd.xlane.f32.xlu1 %v339_v63  ;;  %446 = vadd.xlane.f32.xlu0 %v445_v1  ;;  %v440_v2 = vmul.f32 %v805_v0, %v942_v37 }
 0x211   :  { %v807_v3 = vpop.eup %806 }
 0x212   :  { %v442_v5 = vsel %vm225_vm6, %v440_v2, 0.0  ;;  %v1017_v6 = vmul.f32 %v807_v3, %v936_v27  ;;  %v456_v27 = vpop.permute.xlu1 %455 }
 0x213   :  { %v809_v9 = vpop.eup %808 }
 0x214   :  { %443 = vadd.xlane.f32.xlu1 %v442_v5  ;;  %v546_v10 = vsel %vm225_vm6, %v1017_v6, 0.0  ;;  %v1022_v11 = vmul.f32 %v809_v9, %v942_v37 }
 0x215   :  { %547 = vadd.xlane.f32.xlu0 %v546_v10 }
 0x216   :  { %v543_v14 = vsel %vm225_vm6, %v1022_v11, 0.0  ;;  %v557_v16 = vpop.permute.xlu1 %556 }
 0x218   :  { %544 = vadd.xlane.f32.xlu1 %v543_v14 }
 0x229   :  { %558 = vrot.lane.b32.xlu1 %v979_v22, %s839_s11 }
 0x22b   :  { %457 = vrot.lane.b32.xlu0 %v979_v22, %s838_s10 }
 0x294   :  { %v245_v37 = vpop.xlane.xlu0 %244 }
 0x295   :  { %v247_v17 = vmax.f32 %v245_v37, 1e-09 }
 0x297   :  { %810 = vrcp.f32 %v247_v17 }
 0x298   :  { %v344_v18 = vpop.xlane.xlu0 %343 }
 0x299   :  { %v242_v19 = vpop.xlane.xlu1 %241  ;;  %v346_v20 = vmax.f32 %v344_v18, 1e-09 }
 0x29a   :  { %v246_v21 = vmax.f32 %v242_v19, 1e-09 }
 0x29c   :  { %812 = vrcp.f32 %v246_v21 }
 0x29d   :  { %v341_v23 = vpop.xlane.xlu1 %340  ;;  %v447_v24 = vpop.xlane.xlu0 %446  ;;  %814 = vrcp.f32 %v346_v20  ;;  %v685_v20 = vld [vmem:[%s1070_s4] ss:$0 sm:$0xff] }
 0x29e   :  { %v345_v25 = vmax.f32 %v341_v23, 1e-09  ;;  %v449_v26 = vmax.f32 %v447_v24, 1e-09 }
 0x2a0   :  { %816 = vrcp.f32 %v345_v25 }
 0x2a1   :  { %v444_v13 = vpop.xlane.xlu1 %443  ;;  %818 = vrcp.f32 %v449_v26  ;;  %v811_v30 = vpop.eup %810 }
 0x2a2   :  { %v448_v28 = vmax.f32 %v444_v13, 1e-09  ;;  %v548_v22 = vpop.xlane.xlu0 %547  ;;  %v251_v34 = vmul.f32 %v811_v30, %v990_v45 }
 0x2a3   :  { %v550_v29 = vmax.f32 %v548_v22, 1e-09 }
 0x2a4   :  { %820 = vrcp.f32 %v448_v28 }
 0x2a5   :  { %v545_v31 = vpop.xlane.xlu1 %544  ;;  %822 = vrcp.f32 %v550_v29 }
 0x2a6   :  { %v813_v32 = vpop.eup %812  ;;  %v549_v33 = vmax.f32 %v545_v31, 1e-09  ;;  %v458_v39 = vpop.permute.xlu0 %457 }
 0x2a7   :  { %v250_v35 = vmul.f32 %v813_v32, %v998_v55  ;;  %v815_v36 = vpop.eup %814  ;;  %v464_v43 = vsel %vm258_vm14, %v458_v39, 0 }
 0x2a8   :  { %824 = vrcp.f32 %v549_v33  ;;  %v350_v40 = vmul.f32 %v815_v36, %v995_v53 }
 0x2a9   :  { %v252_v12 = vpack.c.bf16 %v251_v34, %v250_v35  ;;  %v559_v46 = vpop.permute.xlu1 %558 }
 0x2aa   :  { %v817_v38 = vpop.eup %816  ;;  %v565_v50 = vsel %vm258_vm14, %v559_v46, 0 }
 0x2ab   :  { %v349_v41 = vmul.f32 %v817_v38, %v337_v61  ;;  %735 = vmatmul.mubr.msk.bf16.vlgmr.msra.gmra.mrb[4].mxu1 %vm225_vm6, %v252_v12  ;;  %v819_v42 = vpop.eup %818 }
 0x2ac   :  { %747 = vmatpush3.bf16.msra.mxu1 %v456_v27  ;;  %750 = vmatprep.mubr.msk.bf16.mxu1 %vm831_vm1, %v832_v4  ;;  %v453_v47 = vmul.f32 %v819_v42, %v1008_v62 }
 0x2ad   :  { %748 = vmatprep.subr.bf16.mxu1 %v832_v4  ;;  %v351_v44 = vpack.c.bf16 %v350_v40, %v349_v41 }
 0x2ae   :  { %v821_v45 = vpop.eup %820 }
 0x2af   :  { %v452_v48 = vmul.f32 %v821_v45, %v440_v2  ;;  %743 = vmatmul.mubr.msk.bf16.vlgmr.msra.gmra.mrb[4].mxu0 %vm225_vm6, %v351_v44  ;;  %v823_v49 = vpop.eup %822 }
 0x2b0   :  { %749 = vmatpush3.bf16.msra.mxu1 %v464_v43  ;;  %755 = vmatpush3.bf16.msra.mxu0 %v557_v16  ;;  %v554_v53 = vmul.f32 %v823_v49, %v1017_v6 }
 0x2b1   :  { %756 = vmatprep.subr.bf16.mxu0 %v832_v4  ;;  %v454_v51 = vpack.c.bf16 %v453_v47, %v452_v48  ;;  %758 = vmatprep.mubr.msk.bf16.mxu0 %vm831_vm1, %v832_v4  ;;  %vm635_vm1 = vcmask 130048  }
 0x2b2   :  { %v825_v52 = vpop.eup %824 }
 0x2b3   :  { %v553_v54 = vmul.f32 %v825_v52, %v1022_v11  ;;  %751 = vmatmul.mubr.msk.bf16.vlgmr.msra.gmra.mrb[8].mxu1 %vm225_vm6, %v454_v51 }
 0x2b4   :  { %757 = vmatpush3.bf16.msra.mxu0 %v565_v50 }
 0x2b5   :  { %v555_v55 = vpack.c.bf16 %v554_v53, %v553_v54 }
 0x2b7   :  { %759 = vmatmul.mubr.msk.bf16.vlgmr.msra.gmra.mrb[8].mxu0 %vm225_vm6, %v555_v55 }
 0x37e   :  { %v296_v56 = vpop.f32.mrb[4].mxu1 }
 0x37f   :  { %v736_v57 = vpop.f32.mrb[5].mxu1 }
 0x380   :  { %v299_v58 = vpop.f32.mrb[6].mxu1 }
 0x381   :  { %v737_v59 = vpop.f32.mrb[7].mxu1 }
 0x382   :  { %v399_v60 = vpop.f32.mrb[4].mxu0 }
 0x383   :  { %610 = vrot.lane.b32.xlu0 %v399_v60, %s840_s12  ;;  %v744_v61 = vpop.f32.mrb[5].mxu0 }
 0x384   :  { %v402_v4 = vpop.f32.mrb[6].mxu0 }
 0x385   :  { %612 = vrot.lane.b32.xlu1 %v402_v4, %s840_s12  ;;  %v745_v62 = vpop.f32.mrb[7].mxu0 }
 0x386   :  { %v500_v63 = vpop.f32.mrb[8].mxu1 }
 0x387   :  { %618 = vrot.lane.b32.xlu0 %v500_v63, %s841_s13  ;;  %v752_v0 = vpop.f32.mrb[9].mxu1 }
 0x388   :  { %v503_v1 = vpop.f32.mrb[10].mxu1 }
 0x389   :  { %620 = vrot.lane.b32.xlu1 %v503_v1, %s841_s13  ;;  %v753_v2 = vpop.f32.mrb[11].mxu1 }
 0x38a   :  { %v601_v3 = vpop.f32.mrb[8].mxu0 }
 0x38b   :  { %626 = vrot.lane.b32.xlu0 %v601_v3, %s842_s14  ;;  %v760_v5 = vpop.f32.mrb[9].mxu0 }
 0x38c   :  { %v604_v6 = vpop.f32.mrb[10].mxu0 }
 0x38d   :  { %628 = vrot.lane.b32.xlu1 %v604_v6, %s842_s14  ;;  %v761_v9 = vpop.f32.mrb[11].mxu0 }
 0x38f   :  { %640 = vrot.lane.b32.xlu0 %v891_v7, %s843_s15 }
 0x391   :  { %642 = vrot.lane.b32.xlu1 %v896_v8, %s843_s15 }
 0x3f5   :  { %v611_v10 = vpop.permute.xlu0 %610 }
 0x3f6   :  { %v633_v37 = vsel %vm632_vm15, %v296_v56, %v611_v10 }
 0x3f7   :  { %v613_v11 = vpop.permute.xlu1 %612 }
 0x3f8   :  { %v634_v18 = vsel %vm632_vm15, %v299_v58, %v613_v11 }
 0x3f9   :  { %v619_v14 = vpop.permute.xlu0 %618 }
 0x3fa   :  { %v636_v17 = vsel %vm635_vm1, %v633_v37, %v619_v14 }
 0x3fb   :  { %v621_v15 = vpop.permute.xlu1 %620 }
 0x3fc   :  { %v637_v21 = vsel %vm635_vm1, %v634_v18, %v621_v15 }
 0x3fd   :  { %v627_v27 = vpop.permute.xlu0 %626 }
 0x3fe   :  { %v638_v19 = vsel %vm225_vm6, %v636_v17, %v627_v27 }
 0x3ff   :  { %v629_v16 = vpop.permute.xlu1 %628 }
 0x400   :  { %v639_v23 = vsel %vm225_vm6, %v637_v21, %v629_v16 }
 0x401   :  { %v641_v7 = vpop.permute.xlu0 %640 }
 0x402   :  { %v646_v8 = vadd.f32 %v641_v7, %v638_v19 }
 0x403   :  { %v643_v24 = vpop.permute.xlu1 %642 }
 0x404   :  { %v655_v25 = vadd.f32 %v685_v20, %v646_v8  ;;  %v647_v26 = vadd.f32 %v643_v24, %v639_v23 }
 0x406   :  { %v659_v13 = vmin.f32 %v655_v25, 0.0  ;;  %v656_v28 = vadd.f32 %v685_v20, %v647_v26  ;;  %vm657_vm2 = vcmp.gt.f32.partialorder %v655_v25, 0.0 }
 0x408   :  { %v661_v22 = vmul.f32 1.442695, %v659_v13  ;;  %v660_v29 = vmin.f32 %v656_v28, 0.0  ;;  %vm658_vm3 = vcmp.gt.f32.partialorder %v656_v28, 0.0 }
 0x40a   :  { %826 = vpow2.f32 %v661_v22  ;;  %v663_v30 = vmul.f32 1.442695, %v660_v29 }
 0x40c   :  { %828 = vpow2.f32 %v663_v30 }
 0x414   :  { %v827_v31 = vpop.eup %826 }
 0x415   :  { %v686_v32 = vadd.f32 -1.0, %v827_v31 }
 0x416   :  { %v829_v33 = vpop.eup %828 }
 0x417   :  { %v667_v34 = vsel %vm657_vm2, %v655_v25, %v686_v32  ;;  %v687_v35 = vadd.f32 -1.0, %v829_v33 }
 0x418   :  { %669 = vst.msk [vmem:[%s1071_s5] sm:$0xff] %vm31_vm0, %v667_v34 }
 0x419   :  { %v668_v36 = vsel %vm658_vm3, %v656_v28, %v687_v35 }
 0x41a   :  { %670 = vst.msk [vmem:[%s1071_s5 + $0x8] sm:$0xff] %vm31_vm0, %v668_v36 }

// kernel: gat_forward.11
= control target key start
LH: loop header
LB: loop body
LE: loop exit
PB: predicated region body
PF: predicated region fallthrough
CT: control target
= control target key end

     0   :  { %vm29_vm0 = vcmask 261120   ;;  %v670_v2 = vmov 0.0|0.0   ;;  %vm671_vm2 = vmmov 0   ;;  %v672_v4 = vmov 0.0   ;;  %s813_s0 = inlined_call_operand.vmem [shape: f32[8,16], index: 0, kind: input, shape index: {}]   ;;  %s814_s1 = inlined_call_operand.vmem [shape: f32[16,128], index: 1, kind: input, shape index: {}]   ;;  %s815_s2 = inlined_call_operand.vmem [shape: f32[4,32], index: 2, kind: input, shape index: {}]   ;;  %s816_s3 = inlined_call_operand.vmem [shape: f32[32,4], index: 3, kind: input, shape index: {}]   ;;  %s817_s4 = inlined_call_operand.vmem [shape: f32[1,8], index: 4, kind: input, shape index: {}]   ;;  %s818_s5 = inlined_call_operand.hbm [shape: f32[8,8], index: 5, kind: output, shape index: {}]  }
   0x1   :  { %v715_v0 = vld [vmem:[%s814_s1] sm:$0xff]  ;;  %v24_v1 = vld [vmem:[%s814_s1 + $0x8] sm:$0xff]  ;;  %590 = vmatprep.subr.bf16.mxu1 %v670_v2  ;;  %vm592_vm1 = vmpackc.low %vm29_vm0, %vm29_vm0  ;;  %552 = vmatprep.mubr.msk.f32.mxu1 %vm671_vm2, %v672_v4 }
   0x2   :  { %v721_v3 = vpack.c.bf16 %v24_v1, %v715_v0  ;;  %572 = vmatprep.subr.bf16.mxu0 %v672_v4  ;;  %574 = vmatprep.mubr.msk.bf16.mxu0 %vm671_vm2, %v672_v4 }
   0x4   :  { %593 = vmatpush3.bf16.xpose.msk.msra.mxu1 %vm592_vm1, %v721_v3  ;;  %573 = vmatpush3.bf16.msra.mxu0 %v721_v3 }
   0x5   :  { %10 = vsyncpa [#allocation3], 0  ;;  %594 = vmatprep.subr.bf16.mxu1 %v670_v2  ;;  %v109_v5 = vld [vmem:[%s816_s3] sm:$0xff]  ;;  %v110_v6 = vld [vmem:[%s816_s3 + $0x8] sm:$0xff]  ;;  %578 = vmatprep.subr.bf16.mxu0 %v672_v4  ;;  %v673_v12 = vmov 1   ;;  %v674_v13 = vmov 0   ;;  %v191_v20 = vlaneseq }
   0x6   :  { %v28_v7 = vld [vmem:[%s815_s2] sm:$0xf]  ;;  %v595_v8 = vpack.c.bf16 %v110_v6, %v109_v5  ;;  %v111_v9 = vld [vmem:[%s816_s3 + $0x10] sm:$0xff]  ;;  %v112_v10 = vld [vmem:[%s816_s3 + $0x18] sm:$0xff]  ;;  %623 = vset.pattern.permute.xlu1 %v673_v12  ;;  %621 = vset.pattern.permute.xlu0 %v674_v13  ;;  %v675_v18 = vmov 3   ;;  %v676_v19 = vmov 2  }
   0x7   :  { %v598_v11 = vpack.c.bf16 %v112_v10, %v111_v9  ;;  %v192_v21 = vshrl.u32 %v191_v20, 7  ;;  %v759_v30 = vld [vmem:[%s813_s0] sm:$0xff]  ;;  %vm201_vm5 = vcmask 130048   ;;  %s677_s0 = smov 120   ;;  %s678_s6 = smov 112   ;;  %vm495_vm9 = vcmask 64512  }
   0x8   :  { %vm199_vm4 = vcmp.gt.f32.partialorder %v759_v30, 0.0  ;;  %s679_s7 = smov 104   ;;  %s680_s8 = smov 96  }
   0x9   :  { %v193_v22 = vsub.s32 0, %v192_v21  ;;  %v223_v23 = vsub.s32 1, %v192_v21  ;;  %v414_v28 = vsub.s32 3, %v192_v21  ;;  %v340_v29 = vsub.s32 2, %v192_v21  ;;  %s681_s11 = smov [#allocation2]  }
   0xa   :  { %s515_s12 = sshll.u32 %s681_s11, 4  ;;  %s516_s12 = int_to_ptr.vmem [resolvable:$true] %s515_s12 }
   0xb   :  { %553 = vmatmul.mubr.msk.f32.vlgmr.msra.gmra.mrb[0].mxu1 %vm29_vm0, %v28_v7  ;;  %p651_p1 = scmp.lt.s32.totalorder %s516_s12, %s516_s12 }
   0xc   :  { %596 = vmatpush3.bf16.msra.mxu1 %v595_v8  ;;  %563 = vmatprep.mubr.msk.f32.mxu1 %vm671_vm2, %v672_v4 }
   0xd   :  { %597 = vmatprep.subr.bf16.mxu1 %v670_v2 }
  0x10   :  { %599 = vmatpush3.bf16.msra.mxu1 %v598_v11 }
  0x11   :  { %566 = vmatprep.subr.bf16.mxu1 %v672_v4 }
  0x13   :  { %564 = vmatmul.mubr.msk.f32.vlgmr.msra.gmra.mrb[2].mxu1 %vm29_vm0, %v715_v0 }
  0x14   :  { %568 = vmatprep.mubr.msk.bf16.mxu1 %vm671_vm2, %v672_v4 }
  0xde   :  { %v105_v14 = vpop.f32.mrb[0].mxu1 }
  0xdf   :  { %v554_v15 = vpop.f32.mrb[1].mxu1  ;;  %v194_v24 = vrot.slane %v105_v14, %v193_v22  ;;  %v224_v25 = vrot.slane %v105_v14, %v223_v23  ;;  %v415_v34 = vrot.slane %v105_v14, %v414_v28  ;;  %v341_v35 = vrot.slane %v105_v14, %v340_v29 }
  0xe6   :  { %v182_v16 = vpop.f32.mrb[2].mxu1 }
  0xe7   :  { %218 = vperm.xlu1 %623, %v182_v16   ;;  %188 = vperm.xlu0 %621, %v182_v16   ;;  %v565_v17 = vpop.f32.mrb[3].mxu1 }
  0xeb   :  { %624 = vset.pattern.permute.xlu1 %v675_v18  ;;  %622 = vset.pattern.permute.xlu0 %v676_v19 }
  0xec   :  { %409 = vperm.xlu1 %624, %v182_v16   ;;  %335 = vperm.xlu0 %622, %v182_v16  }
  0xf0   :  { %625 = vset.pattern.permute.xlu0 %v675_v18 }
 0x166   :  { %v219_v26 = vpop.permute.xlu1 %218  ;;  %v189_v27 = vpop.permute.xlu0 %188 }
 0x167   :  { %v195_v31 = vadd.f32 %v194_v24, %v189_v27  ;;  %v225_v32 = vadd.f32 %v224_v25, %v219_v26 }
 0x169   :  { %v197_v33 = vmul.f32 0.2, %v195_v31  ;;  %vm196_vm3 = vcmp.gt.f32.partialorder %v195_v31, 0.0  ;;  %v227_v39 = vmul.f32 0.2, %v225_v32  ;;  %vm226_vm6 = vcmp.gt.f32.partialorder %v225_v32, 0.0 }
 0x16b   :  { %v410_v36 = vpop.permute.xlu1 %409  ;;  %v336_v37 = vpop.permute.xlu0 %335  ;;  %v198_v38 = vsel %vm196_vm3, %v195_v31, %v197_v33  ;;  %v228_v48 = vsel %vm226_vm6, %v225_v32, %v227_v39 }
 0x16c   :  { %v416_v40 = vadd.f32 %v415_v34, %v410_v36  ;;  %v342_v41 = vadd.f32 %v341_v35, %v336_v37  ;;  %v200_v42 = vsel %vm199_vm4, %v198_v38, -1e+30  ;;  %v229_v53 = vsel %vm199_vm4, %v228_v48, -1e+30 }
 0x16d   :  { %v202_v43 = vsel %vm201_vm5, %v200_v42, -inf  ;;  %v230_v54 = vsel %vm201_vm5, %v229_v53, -inf }
 0x16e   :  { %v418_v44 = vmul.f32 0.2, %v416_v40  ;;  %v344_v45 = vmul.f32 0.2, %v342_v41  ;;  %203 = vmax.xlane.f32.xlu1 %v202_v43  ;;  %vm417_vm7 = vcmp.gt.f32.partialorder %v416_v40, 0.0  ;;  %vm343_vm8 = vcmp.gt.f32.partialorder %v342_v41, 0.0 }
 0x170   :  { %v419_v46 = vsel %vm417_vm7, %v416_v40, %v418_v44  ;;  %v345_v47 = vsel %vm343_vm8, %v342_v41, %v344_v45 }
 0x171   :  { %v420_v49 = vsel %vm199_vm4, %v419_v46, -1e+30  ;;  %v346_v50 = vsel %vm199_vm4, %v345_v47, -1e+30 }
 0x172   :  { %v421_v51 = vsel %vm201_vm5, %v420_v49, -inf  ;;  %v347_v52 = vsel %vm201_vm5, %v346_v50, -inf }
 0x173   :  { %422 = vmax.xlane.f32.xlu1 %v421_v51  ;;  %348 = vmax.xlane.f32.xlu0 %v347_v52 }
 0x177   :  { %231 = vmax.xlane.f32.xlu0 %v230_v54 }
 0x1fb   :  { %v204_v55 = vpop.xlane.xlu1 %203 }
 0x1fc   :  { %v205_v56 = vsub.f32 %v200_v42, %v204_v55 }
 0x1fe   :  { %v206_v57 = vmul.f32 1.442695, %v205_v56 }
 0x200   :  { %626 = vpow2.f32 %v206_v57  ;;  %v349_v58 = vpop.xlane.xlu0 %348  ;;  %v423_v12 = vpop.xlane.xlu1 %422 }
 0x201   :  { %v350_v59 = vsub.f32 %v346_v50, %v349_v58  ;;  %v424_v13 = vsub.f32 %v420_v49, %v423_v12  ;;  %v531_v49 = vld [vmem:[%s817_s4] ss:$0 sm:$0xff]  ;;  %s646_s4 = scalar_lea.vmem %s516_s12, 128 }
 0x202   :  { %p647_p0 = scmp.ne.s32.totalorder %s516_s12, %s646_s4  ;;  %p652_p2 = scmp.lt.s32.totalorder %s646_s4, %s646_s4 }
 0x203   :  { %v351_v60 = vmul.f32 1.442695, %v350_v59  ;;  %v425_v14 = vmul.f32 1.442695, %v424_v13 }
 0x204   :  { %v232_v61 = vpop.xlane.xlu0 %231  ;;  %p653_p3 = por %p652_p2, %p651_p1 }
 0x205   :  { %v233_v62 = vsub.f32 %v229_v53, %v232_v61  ;;  %628 = vpow2.f32 %v351_v60 }
 0x206   :  { %p654_p4 = pnand %p653_p3, %p647_p0 }
 0x207   :  { %v234_v63 = vmul.f32 1.442695, %v233_v62 }
 0x209   :  { %630 = vpow2.f32 %v234_v63 }
 0x20a   :  { %v627_v1 = vpop.eup %626  ;;  %632 = vpow2.f32 %v425_v14 }
 0x20b   :  { %v208_v2 = vmul.f32 %v627_v1, %v759_v30 }
 0x20d   :  { %v209_v5 = vsel %vm201_vm5, %v208_v2, 0.0 }
 0x20e   :  { %210 = vadd.xlane.f32.xlu0 %v209_v5 }
 0x20f   :  { %v629_v6 = vpop.eup %628 }
 0x210   :  { %v353_v7 = vmul.f32 %v629_v6, %v759_v30 }
 0x212   :  { %v354_v9 = vsel %vm201_vm5, %v353_v7, 0.0 }
 0x213   :  { %v631_v8 = vpop.eup %630  ;;  %355 = vadd.xlane.f32.xlu1 %v354_v9 }
 0x214   :  { %v236_v10 = vmul.f32 %v631_v8, %v759_v30  ;;  %v633_v15 = vpop.eup %632 }
 0x215   :  { %v427_v16 = vmul.f32 %v633_v15, %v759_v30 }
 0x216   :  { %v237_v11 = vsel %vm201_vm5, %v236_v10, 0.0 }
 0x217   :  { %238 = vadd.xlane.f32.xlu0 %v237_v11  ;;  %v428_v17 = vsel %vm201_vm5, %v427_v16, 0.0 }
 0x224   :  { %245 = vrot.lane.b32.xlu1 %v721_v3, %s677_s0 }
 0x22d   :  { %361 = vrot.lane.b32.xlu0 %v721_v3, %s678_s6 }
 0x231   :  { %483 = vrot.lane.b32.xlu0 %v715_v0, %s680_s8 }
 0x248   :  { %429 = vadd.xlane.f32.xlu1 %v428_v17 }
 0x259   :  { %435 = vrot.lane.b32.xlu1 %v721_v3, %s679_s7 }
 0x29b   :  { %v211_v18 = vpop.xlane.xlu0 %210 }
 0x29c   :  { %v212_v19 = vmax.f32 %v211_v18, 1e-09 }
 0x29e   :  { %634 = vrcp.f32 %v212_v19 }
 0x2a0   :  { %v356_v20 = vpop.xlane.xlu1 %355 }
 0x2a1   :  { %v357_v21 = vmax.f32 %v356_v20, 1e-09 }
 0x2a3   :  { %636 = vrcp.f32 %v357_v21 }
 0x2a4   :  { %v239_v22 = vpop.xlane.xlu0 %238  ;;  %v246_v23 = vpop.permute.xlu1 %245 }
 0x2a5   :  { %v240_v24 = vmax.f32 %v239_v22, 1e-09  ;;  %567 = vmatpush3.bf16.msra.mxu1 %v246_v23 }
 0x2a7   :  { %638 = vrcp.f32 %v240_v24 }
 0x2a8   :  { %v635_v25 = vpop.eup %634  ;;  %v362_v28 = vpop.permute.xlu0 %361 }
 0x2a9   :  { %v214_v26 = vmul.f32 %v635_v25, %v208_v2 }
 0x2ab   :  { %v215_v27 = vpack.c.bf16 %v214_v26, %v214_v26 }
 0x2ac   :  { %v484_v47 = vpop.permute.xlu0 %483 }
 0x2ad   :  { %575 = vmatmul.mubr.msk.bf16.vlgmr.msra.gmra.mrb[0].mxu0 %vm201_vm5, %v215_v27  ;;  %v637_v0 = vpop.eup %636 }
 0x2ae   :  { %579 = vmatpush3.bf16.msra.mxu0 %v362_v28  ;;  %580 = vmatprep.mubr.msk.bf16.mxu0 %vm671_vm2, %v672_v4  ;;  %v359_v30 = vmul.f32 %v637_v0, %v353_v7 }
 0x2af   :  { %584 = vmatprep.subr.bf16.mxu0 %v672_v4 }
 0x2b0   :  { %v360_v32 = vpack.c.bf16 %v359_v30, %v359_v30 }
 0x2b1   :  { %v639_v3 = vpop.eup %638 }
 0x2b2   :  { %v242_v29 = vmul.f32 %v639_v3, %v236_v10 }
 0x2b4   :  { %v243_v31 = vpack.c.bf16 %v242_v29, %v242_v29 }
 0x2b6   :  { %569 = vmatmul.mubr.msk.bf16.vlgmr.msra.gmra.mrb[4].mxu1 %vm201_vm5, %v243_v31 }
 0x2b9   :  { %581 = vmatmul.mubr.msk.bf16.vlgmr.msra.gmra.mrb[0].mxu0 %vm201_vm5, %v360_v32 }
 0x2ba   :  { %586 = vmatprep.mubr.msk.bf16.mxu0 %vm671_vm2, %v672_v4 }
 0x2d5   :  { %v430_v33 = vpop.xlane.xlu1 %429 }
 0x2d6   :  { %v431_v34 = vmax.f32 %v430_v33, 1e-09 }
 0x2d8   :  { %640 = vrcp.f32 %v431_v34 }
 0x2d9   :  { %v436_v35 = vpop.permute.xlu1 %435 }
 0x2da   :  { %585 = vmatpush3.bf16.msra.mxu0 %v436_v35 }
 0x2e2   :  { %v641_v36 = vpop.eup %640 }
 0x2e3   :  { %v433_v37 = vmul.f32 %v641_v36, %v427_v16 }
 0x2e5   :  { %v434_v38 = vpack.c.bf16 %v433_v37, %v433_v37 }
 0x2e7   :  { %587 = vmatmul.mubr.msk.bf16.vlgmr.msra.gmra.mrb[0].mxu0 %vm201_vm5, %v434_v38 }
 0x389   :  { %v285_v39 = vpop.f32.mrb[4].mxu1 }
 0x38a   :  { %v570_v40 = vpop.f32.mrb[5].mxu1 }
 0x38b   :  { %v288_v41 = vpop.f32.mrb[6].mxu1 }
 0x38c   :  { %v571_v42 = vpop.f32.mrb[7].mxu1 }
 0x3ba   :  { %v475_v43 = vpop.f32.mrb[0].mxu0 }
 0x3bb   :  { %v600_v44 = vadd.f32 %v475_v43, %v285_v39  ;;  %v588_v45 = vpop.f32.mrb[1].mxu0 }
 0x3bc   :  { %v478_v46 = vpop.f32.mrb[2].mxu0 }
 0x3bd   :  { %v482_v4 = vmul.f32 0.25, %v600_v44  ;;  %v589_v48 = vpop.f32.mrb[3].mxu0 }
 0x3bf   :  { %v486_v50 = vadd.f32 %v484_v47, %v482_v4 }
 0x3c1   :  { %v494_v51 = vadd.f32 %v531_v49, %v486_v50 }
 0x3c3   :  { %v496_v52 = vsel %vm495_vm9, %v494_v51, -inf }
 0x3c4   :  { %497 = vmax.xlane.f32.xlu1 %v496_v52 }
 0x451   :  { %v498_v53 = vpop.xlane.xlu1 %497 }
 0x452   :  { %v499_v54 = vsub.f32 %v494_v51, %v498_v53 }
 0x454   :  { %v500_v55 = vmul.f32 1.442695, %v499_v54 }
 0x456   :  { %642 = vpow2.f32 %v500_v55 }
 0x460   :  { %v643_v56 = vpop.eup %642 }
 0x461   :  { %v502_v57 = vsel %vm495_vm9, %v643_v56, 0.0 }
 0x462   :  { %503 = vadd.xlane.f32.xlu0 %v502_v57 }
 0x4ef   :  { %v504_v58 = vpop.xlane.xlu0 %503 }
 0x4f0   :  { %644 = vlog2.f32 %v504_v58 }
 0x4fa   :  { %v645_v59 = vpop.eup %644 }
 0x4fb   :  { %v506_v60 = vmul.f32 0.6931472, %v645_v59 }
 0x4fd   :  { %v507_v61 = vsub.f32 %v499_v54, %v506_v60 }
 0x4ff   :  { %508 = vst.msk [vmem:[#allocation2] sm:$0xff] %vm495_vm9, %v507_v61 }
 0x500   :  { %657 = shalt.err (!%p654_p4)
}
 0x501   :  { %s658_s15 = scalar_lea.hbm %s818_s5, 128 }
 0x502   :  { %p659_p5 = scmp.ne.s32.totalorder %s818_s5, %s658_s15  ;;  %p662_p6 = scmp.lt.u32.totalorder %s658_s15, %s818_s5 }
 0x504   :  { %p664_p7 = pnand %p662_p6, %p659_p5 }
 0x506   :  { %667 = shalt.err (!%p664_p7)
}
 0x507   :  { %518 = dma.vmem_to_hbm [thread:$0]  %s516_s12, 128, %s818_s5, [#allocation3]  }
 0x508   :  { %668 = dma.done.wait [#allocation3], 128  }
 0x509   :  { %669 = vsyncadd [#allocation3], 4294967168 }
 0x50a   :  { %522 = vsyncpa [#allocation3], 1 }

</bundles_post_ra>
